<compile_context>
chip_gen: v7x
topology: tpu7x:2x2x1
jax: 0.10.0
libtpu: 0.0.40
codegen_flags: <defaults>
</compile_context>

<pallas_src>
import functools
import math

import jax
import jax.numpy as jnp
from jax.experimental import pallas as pl
from jax.experimental.pallas import tpu as pltpu

EPS = 1e-5            # torch.nn.LayerNorm default
NEG_INF = -1e30       # additive key-padding mask value (kept in f32, pre-exp)
LANE = 128
NUM_QKV_CHUNKS = 3    # grid steps: Q, K, V chunks of the merged [H, 3H] projection weight


# ----------------------------- in-kernel math ------------------------------ #

def _recip(x):
    # EUP approximate reciprocal + one Newton step (~1e-7 rel err); frees the VALU divide.
    r = pl.reciprocal(x, approx=True)
    return r * (2.0 - x * r)


def _erf(x):
    # Abramowitz & Stegun 7.1.26 polynomial (f32-noise accuracy).
    a1, a2, a3, a4, a5 = 0.254829592, -0.284496736, 1.421413741, -1.453152027, 1.061405429
    p = 0.3275911
    sgn = jnp.where(x < 0.0, -1.0, 1.0)
    ax = jnp.abs(x)
    t = _recip(1.0 + p * ax)
    poly = ((((a5 * t + a4) * t + a3) * t + a2) * t + a1) * t
    return sgn * (1.0 - poly * jnp.exp(-ax * ax))


def _gelu(x):
    # exact GELU, matching torch.nn.GELU() default (approximate='none')
    return 0.5 * x * (1.0 + _erf(x * (1.0 / math.sqrt(2.0))))


def _layernorm(x, gamma, beta):
    # one-pass variance: E[x^2] - E[x]^2 (saves a full-row subtract+square per LN)
    mean = jnp.mean(x, axis=-1, keepdims=True)
    var = jnp.mean(x * x, axis=-1, keepdims=True) - mean * mean
    return (x - mean) * jax.lax.rsqrt(var + EPS) * gamma + beta


# ------------------------------ fused kernel -------------------------------- #

def fused_forward_kernel(
        feats_ref, cls_ref, kbias_ref,
        fe_w1_ref, fe_b1_ref, fe_g1_ref, fe_be1_ref,
        fe_w2_ref, fe_b2_ref, fe_g2_ref, fe_be2_ref,
        wqkv_ref, bqkv_ref, wo_ref, bo_ref,
        cl_w1_ref, cl_b1_ref, cl_g1_ref, cl_be1_ref, cl_w2_ref, cl_b2_ref,
        out_ref,
        qkv_sc, feat_sc,
        *, num_heads):
    f32 = jnp.float32
    bf = wqkv_ref.dtype
    j = pl.program_id(0)

    # ---- every grid step: one [Bp,H] @ [H,H] chunk of the merged QKV projection ----
    # (full-lane-width bf16 matmul; the next chunk's weight DMA overlaps this compute)
    qkv_sc[j] = (jnp.dot(cls_ref[...], wqkv_ref[...], preferred_element_type=f32)
                 + bqkv_ref[...])

    # ---- step 0: feature_encoder Linear-LN-GELU-Linear-LN-GELU (hidden under DMA) ----
    @pl.when(j == 0)
    def _():
        h = (jnp.dot(feats_ref[...], fe_w1_ref[...], preferred_element_type=f32)
             + fe_b1_ref[...])
        h = _gelu(_layernorm(h, fe_g1_ref[...], fe_be1_ref[...]))
        h = (jnp.dot(h.astype(bf), fe_w2_ref[...], preferred_element_type=f32)
             + fe_b2_ref[...])
        feat_sc[...] = _gelu(_layernorm(h, fe_g2_ref[...], fe_be2_ref[...]))   # [Bp, H]

    # ---- last step: fusion MHA over the length-B CLS "sequence" + classifier ----
    @pl.when(j == pl.num_programs(0) - 1)
    def _():
        q = qkv_sc[0]                                   # [Bp, H] f32
        k = qkv_sc[1]
        v = qkv_sc[2]
        hidden = q.shape[-1]
        hd = hidden // num_heads
        scale = 1.0 / math.sqrt(hd)
        kbias = kbias_ref[...]                          # [1, Bp]; -inf on padded keys

        heads = []
        for n in range(num_heads):                      # static unroll; lane slices only
            lo = n * hd
            qn = q[:, lo:lo + hd].astype(bf)
            kn = k[:, lo:lo + hd].astype(bf)
            vn = v[:, lo:lo + hd].astype(bf)
            s = jax.lax.dot_general(qn, kn, (((1,), (1,)), ((), ())),
                                    preferred_element_type=f32) * scale        # [Bp, Bp]
            s = s + kbias                               # mask padded keys (f32, pre-exp)
            s = s - jnp.max(s, axis=-1, keepdims=True)
            e = jnp.exp(s)
            p = e * _recip(jnp.sum(e, axis=-1, keepdims=True))
            heads.append(jnp.dot(p.astype(bf), vn, preferred_element_type=f32))

        a = jnp.concatenate(heads, axis=-1)             # concat heads -> [Bp, H]
        attn_cls = (jnp.dot(a.astype(bf), wo_ref[...], preferred_element_type=f32)
                    + bo_ref[...])                      # single [H,H] out-proj matmul

        # classifier: Linear-LN-GELU-Linear on fused_automodel[:,0] + feature_encoded
        z = attn_cls + feat_sc[...]
        h = (jnp.dot(z.astype(bf), cl_w1_ref[...], preferred_element_type=f32)
             + cl_b1_ref[...])
        h = _gelu(_layernorm(h, cl_g1_ref[...], cl_be1_ref[...]))
        out_ref[...] = (jnp.dot(h.astype(bf), cl_w2_ref[...], preferred_element_type=f32)
                        + cl_b2_ref[...])               # [Bp, Lp] lane-dense (unmasked vst)


# --------------------------- one-time weight packing -------------------------- #

def pack_params(p):
    """Model-load-time repacking (hoisted out of the per-call forward path)."""
    packed = dict(p)
    packed["wqkv"] = jnp.concatenate([p["wq"], p["wk"], p["wv"]], axis=1)   # [H, 3H] bf16
    packed["bqkv"] = jnp.concatenate([p["bq"], p["bk"], p["bv"]], axis=1)   # [1, 3H] f32
    num_labels = p["cl_w2"].shape[1]
    lp = ((num_labels + LANE - 1) // LANE) * LANE
    packed["cl_w2p"] = jnp.pad(p["cl_w2"], ((0, 0), (0, lp - num_labels)))  # lane-dense out
    packed["cl_b2p"] = jnp.pad(p["cl_b2"], ((0, 0), (0, lp - num_labels)))
    # NOTE: on v5e/v6e these bf16 weights could be stored int8 (per-channel scales), and
    # fp8 on v7x, to further cut the DMA-bound weight traffic.
    return packed


# ------------------------------ pallas wrapper ------------------------------- #

def _vmem():
    return pl.BlockSpec(memory_space=pltpu.MemorySpace.VMEM)


def fused_forward(cls_tokens, additional_features, p, num_heads):
    B, H = cls_tokens.shape
    assert H % LANE == 0, "hidden size must be a multiple of 128 (mDeBERTa-v3: 768)"
    num_labels = p["cl_w2"].shape[1]
    Lp = p["cl_b2p"].shape[1]
    bf = p["wqkv"].dtype

    # Row padding to >=8 sublanes; padded rows are masked out of the attention keys.
    Bp = max(8, ((B + 7) // 8) * 8)
    cls_p = jnp.pad(cls_tokens, ((0, Bp - B), (0, 0))).astype(bf)       # matmul-only -> bf16
    feats_p = jnp.pad(additional_features, ((0, Bp - B), (0, 0))).astype(bf)
    key_bias = jnp.where(jnp.arange(Bp) < B, 0.0, NEG_INF).astype(jnp.float32)[None, :]

    args = (feats_p, cls_p, key_bias,
            p["fe_w1"], p["fe_b1"], p["fe_g1"], p["fe_be1"],
            p["fe_w2"], p["fe_b2"], p["fe_g2"], p["fe_be2"],
            p["wqkv"], p["bqkv"], p["wo"], p["bo"],
            p["cl_w1"], p["cl_b1"], p["cl_g1"], p["cl_be1"], p["cl_w2p"], p["cl_b2p"])

    full = _vmem()
    in_specs = [
        full, full, full,                            # feats, cls, key_bias
        full, full, full, full,                      # feature_encoder layer 1
        full, full, full, full,                      # feature_encoder layer 2
        pl.BlockSpec((H, H), lambda j: (0, j)),      # merged QKV weight: Q/K/V chunk per step
        pl.BlockSpec((1, H), lambda j: (0, j)),      # merged QKV bias chunk
        full, full,                                  # wo, bo
        full, full, full, full, full, full,          # classifier
    ]

    out = pl.pallas_call(
        functools.partial(fused_forward_kernel, num_heads=num_heads),
        grid=(NUM_QKV_CHUNKS,),
        out_shape=jax.ShapeDtypeStruct((Bp, Lp), jnp.float32),
        in_specs=in_specs,
        out_specs=pl.BlockSpec((Bp, Lp), lambda j: (0, 0)),
        scratch_shapes=[pltpu.VMEM((NUM_QKV_CHUNKS, Bp, H), jnp.float32),   # q/k/v
                        pltpu.VMEM((Bp, H), jnp.float32)],                  # feature_encoded
        compiler_params=pltpu.CompilerParams(dimension_semantics=("arbitrary",)),
        # NOTE: at real mDeBERTa sizes (H=768, large CLS batch) set vmem_limit_bytes and
        # tile the attention over the key axis flash-style (v7x has only 64 MiB VMEM),
        # and add a "parallel" row-tile axis to use both v7x TensorCores.
    )(*args)
    return out[:B, :num_labels]


def forward(params, input_ids, additional_features, attention_mask, token_type_ids,
            num_heads=8):
    # TODO(synk): the pretrained mDeBERTa-v3 encoder (AutoModel backbone) has no clean
    # in-script equivalent; its last_hidden_state is stood in for by a deterministic
    # embedding lookup (attention_mask / token_type_ids unused by the stub).
    last_hidden = params["emb"][input_ids]        # [B, S, H]
    cls_tokens = last_hidden[:, 0, :]             # the only slice the fusion output needs
    return fused_forward(cls_tokens, additional_features, params, num_heads)


# --------------------------- pure-JAX reference ----------------------------- #

def reference_forward(params, input_ids, additional_features, num_heads=8):
    gelu = lambda x: jax.nn.gelu(x, approximate=False)
    f32 = lambda a: a.astype(jnp.float32)

    last_hidden = params["emb"][input_ids]
    cls_tokens = last_hidden[:, 0, :]

    h = additional_features @ f32(params["fe_w1"]) + params["fe_b1"]
    h = gelu(_layernorm(h, params["fe_g1"], params["fe_be1"]))
    h = h @ f32(params["fe_w2"]) + params["fe_b2"]
    feat = gelu(_layernorm(h, params["fe_g2"], params["fe_be2"]))

    B, H = cls_tokens.shape
    hd = H // num_heads
    q = (cls_tokens @ f32(params["wq"]) + params["bq"]).reshape(B, num_heads, hd).transpose(1, 0, 2)
    k = (cls_tokens @ f32(params["wk"]) + params["bk"]).reshape(B, num_heads, hd).transpose(1, 0, 2)
    v = (cls_tokens @ f32(params["wv"]) + params["bv"]).reshape(B, num_heads, hd).transpose(1, 0, 2)
    s = jnp.einsum("hld,hmd->hlm", q, k) / math.sqrt(hd)
    pr = jax.nn.softmax(s, axis=-1)
    ao = jnp.einsum("hlm,hmd->hld", pr, v).transpose(1, 0, 2).reshape(B, H)
    attn_cls = ao @ f32(params["wo"]) + params["bo"]

    x = attn_cls + feat
    h = x @ f32(params["cl_w1"]) + params["cl_b1"]
    h = gelu(_layernorm(h, params["cl_g1"], params["cl_be1"]))
    return h @ f32(params["cl_w2"]) + params["cl_b2"]


# ----------------------------------- main ------------------------------------ #

if __name__ == "__main__":
    B, S, F, H, NH, VOCAB, NUM_LABELS, FE_MID = 2, 8, 16, 128, 8, 128, 5, 256

    key = jax.random.PRNGKey(0)
    keys = iter(jax.random.split(key, 40))

    def nrm(shape, scale=0.02):
        return scale * jax.random.normal(next(keys), shape, jnp.float32)

    def w(shape, scale=0.02):      # matmul weights live in HBM as bf16
        return nrm(shape, scale).astype(jnp.bfloat16)

    params = {
        # stand-in "AutoModel" embedding table
        "emb": nrm((VOCAB, H), scale=0.1),
        # feature_encoder: Linear(F,256) LN GELU  Linear(256,H) LN GELU
        "fe_w1": w((F, FE_MID)), "fe_b1": nrm((1, FE_MID)),
        "fe_g1": 1.0 + nrm((1, FE_MID)), "fe_be1": nrm((1, FE_MID)),
        "fe_w2": w((FE_MID, H)), "fe_b2": nrm((1, H)),
        "fe_g2": 1.0 + nrm((1, H)), "fe_be2": nrm((1, H)),
        # fusion: MultiheadAttention(H, 8)
        "wq": w((H, H)), "wk": w((H, H)), "wv": w((H, H)),
        "bq": nrm((1, H)), "bk": nrm((1, H)), "bv": nrm((1, H)),
        "wo": w((H, H)), "bo": nrm((1, H)),
        # classifier: Linear(H,H) LN GELU Linear(H,num_labels)
        "cl_w1": w((H, H)), "cl_b1": nrm((1, H)),
        "cl_g1": 1.0 + nrm((1, H)), "cl_be1": nrm((1, H)),
        "cl_w2": w((H, NUM_LABELS)), "cl_b2": nrm((1, NUM_LABELS)),
    }
    params = pack_params(params)   # one-time weight repacking, hoisted out of the forward path

    input_ids = jax.random.randint(next(keys), (B, S), 0, VOCAB, dtype=jnp.int32)
    additional_features = jax.random.normal(next(keys), (B, F), jnp.float32)
    attention_mask = jnp.ones((B, S), jnp.int32)
    token_type_ids = jnp.zeros((B, S), jnp.int32)

    fwd = jax.jit(functools.partial(forward, num_heads=NH))
    logits = fwd(params, input_ids, additional_features, attention_mask, token_type_ids)
    logits = jax.block_until_ready(logits)

    ref = reference_forward(params, input_ids, additional_features, num_heads=NH)
    assert logits.shape == (B, NUM_LABELS), logits.shape
    # kernel uses bf16 MXU inputs + EUP approx-reciprocal (Newton-refined) vs f32 reference
    err = jnp.max(jnp.abs(logits - ref))
    assert jnp.allclose(logits, ref, atol=2e-2, rtol=2e-2), (logits, ref, err)

    print("KERNEL_OK")
</pallas_src>

<mosaic_0001>
module attributes {stable_mosaic.version = 11 : i64} {
  func.func @fused_forward_kernel(%arg0: i32, %arg1: memref<8x16xbf16, #tpu.memory_space<vmem>>, %arg2: memref<8x128xbf16, #tpu.memory_space<vmem>>, %arg3: memref<1x8xf32, #tpu.memory_space<vmem>>, %arg4: memref<16x256xbf16, #tpu.memory_space<vmem>>, %arg5: memref<1x256xf32, #tpu.memory_space<vmem>>, %arg6: memref<1x256xf32, #tpu.memory_space<vmem>>, %arg7: memref<1x256xf32, #tpu.memory_space<vmem>>, %arg8: memref<256x128xbf16, #tpu.memory_space<vmem>>, %arg9: memref<1x128xf32, #tpu.memory_space<vmem>>, %arg10: memref<1x128xf32, #tpu.memory_space<vmem>>, %arg11: memref<1x128xf32, #tpu.memory_space<vmem>>, %arg12: memref<128x128xbf16, #tpu.memory_space<vmem>>, %arg13: memref<1x128xf32, #tpu.memory_space<vmem>>, %arg14: memref<128x128xbf16, #tpu.memory_space<vmem>>, %arg15: memref<1x128xf32, #tpu.memory_space<vmem>>, %arg16: memref<128x128xbf16, #tpu.memory_space<vmem>>, %arg17: memref<1x128xf32, #tpu.memory_space<vmem>>, %arg18: memref<1x128xf32, #tpu.memory_space<vmem>>, %arg19: memref<1x128xf32, #tpu.memory_space<vmem>>, %arg20: memref<128x128xbf16, #tpu.memory_space<vmem>>, %arg21: memref<1x128xf32, #tpu.memory_space<vmem>>, %arg22: memref<8x128xf32, #tpu.memory_space<vmem>>, %arg23: memref<3x8x128xf32, #tpu.memory_space<vmem>>, %arg24: memref<8x128xf32, #tpu.memory_space<vmem>>) attributes {dimension_semantics = [#tpu.dimension_semantics<arbitrary>], iteration_bounds = array<i64: 3>, scalar_prefetch = 0 : i64, scratch_operands = 2 : i64, tpu.core_type = #tpu.core_type<tc>, window_params = [{pipeline_mode = #tpu.pipeline_mode<synchronous>, transform_indices = @transform_0, window_bounds = array<i64: 8, 16>}, {pipeline_mode = #tpu.pipeline_mode<synchronous>, transform_indices = @transform_1, window_bounds = array<i64: 8, 128>}, {pipeline_mode = #tpu.pipeline_mode<synchronous>, transform_indices = @transform_2, window_bounds = array<i64: 1, 8>}, {pipeline_mode = #tpu.pipeline_mode<synchronous>, transform_indices = @transform_3, window_bounds = array<i64: 16, 256>}, {pipeline_mode = #tpu.pipeline_mode<synchronous>, transform_indices = @transform_4, window_bounds = array<i64: 1, 256>}, {pipeline_mode = #tpu.pipeline_mode<synchronous>, transform_indices = @transform_5, window_bounds = array<i64: 1, 256>}, {pipeline_mode = #tpu.pipeline_mode<synchronous>, transform_indices = @transform_6, window_bounds = array<i64: 1, 256>}, {pipeline_mode = #tpu.pipeline_mode<synchronous>, transform_indices = @transform_7, window_bounds = array<i64: 256, 128>}, {pipeline_mode = #tpu.pipeline_mode<synchronous>, transform_indices = @transform_8, window_bounds = array<i64: 1, 128>}, {pipeline_mode = #tpu.pipeline_mode<synchronous>, transform_indices = @transform_9, window_bounds = array<i64: 1, 128>}, {pipeline_mode = #tpu.pipeline_mode<synchronous>, transform_indices = @transform_10, window_bounds = array<i64: 1, 128>}, {transform_indices = @transform_11, window_bounds = array<i64: 128, 128>}, {transform_indices = @transform_12, window_bounds = array<i64: 1, 128>}, {pipeline_mode = #tpu.pipeline_mode<synchronous>, transform_indices = @transform_13, window_bounds = array<i64: 128, 128>}, {pipeline_mode = #tpu.pipeline_mode<synchronous>, transform_indices = @transform_14, window_bounds = array<i64: 1, 128>}, {pipeline_mode = #tpu.pipeline_mode<synchronous>, transform_indices = @transform_15, window_bounds = array<i64: 128, 128>}, {pipeline_mode = #tpu.pipeline_mode<synchronous>, transform_indices = @transform_16, window_bounds = array<i64: 1, 128>}, {pipeline_mode = #tpu.pipeline_mode<synchronous>, transform_indices = @transform_17, window_bounds = array<i64: 1, 128>}, {pipeline_mode = #tpu.pipeline_mode<synchronous>, transform_indices = @transform_18, window_bounds = array<i64: 1, 128>}, {pipeline_mode = #tpu.pipeline_mode<synchronous>, transform_indices = @transform_19, window_bounds = array<i64: 128, 128>}, {pipeline_mode = #tpu.pipeline_mode<synchronous>, transform_indices = @transform_20, window_bounds = array<i64: 1, 128>}, {pipeline_mode = #tpu.pipeline_mode<synchronous>, transform_indices = @transform_21, window_bounds = array<i64: 8, 128>}]} {
    %c0 = arith.constant 0 : index
    %c0_0 = arith.constant 0 : index
    %0 = vector.load %arg2[%c0, %c0_0] : memref<8x128xbf16, #tpu.memory_space<vmem>>, vector<8x128xbf16>
    %c0_1 = arith.constant 0 : index
    %c0_2 = arith.constant 0 : index
    %1 = vector.load %arg12[%c0_1, %c0_2] : memref<128x128xbf16, #tpu.memory_space<vmem>>, vector<128x128xbf16>
    %cst = arith.constant dense<0.000000e+00> : vector<8x128xf32>
    %2 = tpu.matmul %0, %1, %cst {dimension_numbers = #tpu.dot_dimension_numbers<[1], [0], [0], [1], [0, 0, 1, 1], [], []>} : vector<8x128xbf16>, vector<128x128xbf16>, vector<8x128xf32> -> vector<8x128xf32>
    %c0_3 = arith.constant 0 : index
    %c0_4 = arith.constant 0 : index
    %3 = vector.load %arg13[%c0_3, %c0_4] : memref<1x128xf32, #tpu.memory_space<vmem>>, vector<1x128xf32>
    %4 = vector.broadcast %3 : vector<1x128xf32> to vector<8x128xf32>
    %5 = arith.addf %2, %4 : vector<8x128xf32>
    %6 = arith.index_cast %arg0 : i32 to index
    %c0_5 = arith.constant 0 : index
    %c0_6 = arith.constant 0 : index
    %7 = vector.load %arg23[%6, %c0_5, %c0_6] : memref<3x8x128xf32, #tpu.memory_space<vmem>>, vector<1x8x128xf32>
    %8 = vector.shape_cast %7 : vector<1x8x128xf32> to vector<8x128xf32>
    %9 = vector.shape_cast %5 : vector<8x128xf32> to vector<1x8x128xf32>
    tpu.vector_store %arg23[%6, %c0_5, %c0_6], %9 {strides = array<i32>} : memref<3x8x128xf32, #tpu.memory_space<vmem>>, vector<1x8x128xf32>,
    %c0_i32 = arith.constant 0 : i32
    %10 = arith.cmpi eq, %arg0, %c0_i32 : i32
    %11 = arith.extui %10 : i1 to i32
    %c0_i32_7 = arith.constant 0 : i32
    %12 = arith.cmpi ne, %11, %c0_i32_7 : i32
    scf.if %12 {
      %c0_9 = arith.constant 0 : index
      %c0_10 = arith.constant 0 : index
      %16 = vector.load %arg1[%c0_9, %c0_10] : memref<8x16xbf16, #tpu.memory_space<vmem>>, vector<8x16xbf16>
      %c0_11 = arith.constant 0 : index
      %c0_12 = arith.constant 0 : index
      %17 = vector.load %arg4[%c0_11, %c0_12] : memref<16x256xbf16, #tpu.memory_space<vmem>>, vector<16x256xbf16>
      %cst_13 = arith.constant dense<0.000000e+00> : vector<8x256xf32>
      %18 = tpu.matmul %16, %17, %cst_13 {dimension_numbers = #tpu.dot_dimension_numbers<[1], [0], [0], [1], [0, 0, 1, 1], [], []>} : vector<8x16xbf16>, vector<16x256xbf16>, vector<8x256xf32> -> vector<8x256xf32>
      %c0_14 = arith.constant 0 : index
      %c0_15 = arith.constant 0 : index
      %19 = vector.load %arg5[%c0_14, %c0_15] : memref<1x256xf32, #tpu.memory_space<vmem>>, vector<1x256xf32>
      %20 = vector.broadcast %19 : vector<1x256xf32> to vector<8x256xf32>
      %21 = arith.addf %18, %20 : vector<8x256xf32>
      %c0_16 = arith.constant 0 : index
      %c0_17 = arith.constant 0 : index
      %22 = vector.load %arg6[%c0_16, %c0_17] : memref<1x256xf32, #tpu.memory_space<vmem>>, vector<1x256xf32>
      %c0_18 = arith.constant 0 : index
      %c0_19 = arith.constant 0 : index
      %23 = vector.load %arg7[%c0_18, %c0_19] : memref<1x256xf32, #tpu.memory_space<vmem>>, vector<1x256xf32>
      %cst_20 = arith.constant dense<0.000000e+00> : vector<8xf32>
      %24 = vector.multi_reduction <add>, %21, %cst_20 [1] : vector<8x256xf32> to vector<8xf32>
      %25 = vector.shape_cast %24 : vector<8xf32> to vector<8x1xf32>
      %cst_21 = arith.constant 2.560000e+02 : f32
      %26 = vector.broadcast %cst_21 : f32 to vector<8x1xf32>
      %27 = arith.divf %25, %26 : vector<8x1xf32>
      %28 = arith.mulf %21, %21 : vector<8x256xf32>
      %cst_22 = arith.constant dense<0.000000e+00> : vector<8xf32>
      %29 = vector.multi_reduction <add>, %28, %cst_22 [1] : vector<8x256xf32> to vector<8xf32>
      %30 = vector.shape_cast %29 : vector<8xf32> to vector<8x1xf32>
      %cst_23 = arith.constant 2.560000e+02 : f32
      %31 = vector.broadcast %cst_23 : f32 to vector<8x1xf32>
      %32 = arith.divf %30, %31 : vector<8x1xf32>
      %33 = arith.mulf %27, %27 : vector<8x1xf32>
      %34 = arith.subf %32, %33 : vector<8x1xf32>
      %35 = vector.broadcast %27 : vector<8x1xf32> to vector<8x256xf32>
      %36 = arith.subf %21, %35 : vector<8x256xf32>
      %cst_24 = arith.constant 9.99999974E-6 : f32
      %37 = vector.broadcast %cst_24 : f32 to vector<8x1xf32>
      %38 = arith.addf %34, %37 : vector<8x1xf32>
      %39 = math.rsqrt %38 : vector<8x1xf32>
      %40 = vector.broadcast %39 : vector<8x1xf32> to vector<8x256xf32>
      %41 = arith.mulf %36, %40 : vector<8x256xf32>
      %42 = vector.broadcast %22 : vector<1x256xf32> to vector<8x256xf32>
      %43 = arith.mulf %41, %42 : vector<8x256xf32>
      %44 = vector.broadcast %23 : vector<1x256xf32> to vector<8x256xf32>
      %45 = arith.addf %43, %44 : vector<8x256xf32>
      %cst_25 = arith.constant 5.000000e-01 : f32
      %46 = vector.broadcast %cst_25 : f32 to vector<8x256xf32>
      %47 = arith.mulf %46, %45 : vector<8x256xf32>
      %cst_26 = arith.constant 0.707106769 : f32
      %48 = vector.broadcast %cst_26 : f32 to vector<8x256xf32>
      %49 = arith.mulf %45, %48 : vector<8x256xf32>
      %cst_27 = arith.constant 0.000000e+00 : f32
      %50 = vector.broadcast %cst_27 : f32 to vector<8x256xf32>
      %51 = arith.cmpf olt, %49, %50 : vector<8x256xf32>
      %cst_28 = arith.constant -1.000000e+00 : f32
      %cst_29 = arith.constant 1.000000e+00 : f32
      %52 = vector.broadcast %cst_28 : f32 to vector<8x256xf32>
      %53 = vector.broadcast %cst_29 : f32 to vector<8x256xf32>
      %54 = arith.select %51, %52, %53 : vector<8x256xi1>, vector<8x256xf32>
      %55 = math.absf %49 : vector<8x256xf32>
      %cst_30 = arith.constant 0.327591091 : f32
      %56 = vector.broadcast %cst_30 : f32 to vector<8x256xf32>
      %57 = arith.mulf %56, %55 : vector<8x256xf32>
      %cst_31 = arith.constant 1.000000e+00 : f32
      %58 = vector.broadcast %cst_31 : f32 to vector<8x256xf32>
      %59 = arith.addf %58, %57 : vector<8x256xf32>
      %60 = tpu.reciprocal %59 {approx = true} : vector<8x256xf32> -> vector<8x256xf32>
      %61 = arith.mulf %59, %60 : vector<8x256xf32>
      %cst_32 = arith.constant 2.000000e+00 : f32
      %62 = vector.broadcast %cst_32 : f32 to vector<8x256xf32>
      %63 = arith.subf %62, %61 : vector<8x256xf32>
      %64 = arith.mulf %60, %63 : vector<8x256xf32>
      %cst_33 = arith.constant 1.06140542 : f32
      %65 = vector.broadcast %cst_33 : f32 to vector<8x256xf32>
      %66 = arith.mulf %65, %64 : vector<8x256xf32>
      %cst_34 = arith.constant -1.45315206 : f32
      %67 = vector.broadcast %cst_34 : f32 to vector<8x256xf32>
      %68 = arith.addf %66, %67 : vector<8x256xf32>
      %69 = arith.mulf %68, %64 : vector<8x256xf32>
      %cst_35 = arith.constant 1.42141378 : f32
      %70 = vector.broadcast %cst_35 : f32 to vector<8x256xf32>
      %71 = arith.addf %69, %70 : vector<8x256xf32>
      %72 = arith.mulf %71, %64 : vector<8x256xf32>
      %cst_36 = arith.constant -0.284496725 : f32
      %73 = vector.broadcast %cst_36 : f32 to vector<8x256xf32>
      %74 = arith.addf %72, %73 : vector<8x256xf32>
      %75 = arith.mulf %74, %64 : vector<8x256xf32>
      %cst_37 = arith.constant 0.254829586 : f32
      %76 = vector.broadcast %cst_37 : f32 to vector<8x256xf32>
      %77 = arith.addf %75, %76 : vector<8x256xf32>
      %78 = arith.mulf %77, %64 : vector<8x256xf32>
      %cst_38 = arith.constant 0.000000e+00 : f32
      %79 = vector.broadcast %cst_38 : f32 to vector<8x256xf32>
      %80 = arith.subf %79, %55 : vector<8x256xf32>
      %81 = arith.mulf %80, %55 : vector<8x256xf32>
      %82 = math.exp %81 : vector<8x256xf32>
      %83 = arith.mulf %78, %82 : vector<8x256xf32>
      %cst_39 = arith.constant 1.000000e+00 : f32
      %84 = vector.broadcast %cst_39 : f32 to vector<8x256xf32>
      %85 = arith.subf %84, %83 : vector<8x256xf32>
      %86 = arith.mulf %54, %85 : vector<8x256xf32>
      %cst_40 = arith.constant 1.000000e+00 : f32
      %87 = vector.broadcast %cst_40 : f32 to vector<8x256xf32>
      %88 = arith.addf %87, %86 : vector<8x256xf32>
      %89 = arith.mulf %47, %88 : vector<8x256xf32>
      %90 = arith.truncf %89 : vector<8x256xf32> to vector<8x256xbf16>
      %c0_41 = arith.constant 0 : index
      %c0_42 = arith.constant 0 : index
      %91 = vector.load %arg8[%c0_41, %c0_42] : memref<256x128xbf16, #tpu.memory_space<vmem>>, vector<256x128xbf16>
      %cst_43 = arith.constant dense<0.000000e+00> : vector<8x128xf32>
      %92 = tpu.matmul %90, %91, %cst_43 {dimension_numbers = #tpu.dot_dimension_numbers<[1], [0], [0], [1], [0, 0, 1, 1], [], []>} : vector<8x256xbf16>, vector<256x128xbf16>, vector<8x128xf32> -> vector<8x128xf32>
      %c0_44 = arith.constant 0 : index
      %c0_45 = arith.constant 0 : index
      %93 = vector.load %arg9[%c0_44, %c0_45] : memref<1x128xf32, #tpu.memory_space<vmem>>, vector<1x128xf32>
      %94 = vector.broadcast %93 : vector<1x128xf32> to vector<8x128xf32>
      %95 = arith.addf %92, %94 : vector<8x128xf32>
      %c0_46 = arith.constant 0 : index
      %c0_47 = arith.constant 0 : index
      %96 = vector.load %arg10[%c0_46, %c0_47] : memref<1x128xf32, #tpu.memory_space<vmem>>, vector<1x128xf32>
      %c0_48 = arith.constant 0 : index
      %c0_49 = arith.constant 0 : index
      %97 = vector.load %arg11[%c0_48, %c0_49] : memref<1x128xf32, #tpu.memory_space<vmem>>, vector<1x128xf32>
      %cst_50 = arith.constant dense<0.000000e+00> : vector<8xf32>
      %98 = vector.multi_reduction <add>, %95, %cst_50 [1] : vector<8x128xf32> to vector<8xf32>
      %99 = vector.shape_cast %98 : vector<8xf32> to vector<8x1xf32>
      %cst_51 = arith.constant 1.280000e+02 : f32
      %100 = vector.broadcast %cst_51 : f32 to vector<8x1xf32>
      %101 = arith.divf %99, %100 : vector<8x1xf32>
      %102 = arith.mulf %95, %95 : vector<8x128xf32>
      %cst_52 = arith.constant dense<0.000000e+00> : vector<8xf32>
      %103 = vector.multi_reduction <add>, %102, %cst_52 [1] : vector<8x128xf32> to vector<8xf32>
      %104 = vector.shape_cast %103 : vector<8xf32> to vector<8x1xf32>
      %cst_53 = arith.constant 1.280000e+02 : f32
      %105 = vector.broadcast %cst_53 : f32 to vector<8x1xf32>
      %106 = arith.divf %104, %105 : vector<8x1xf32>
      %107 = arith.mulf %101, %101 : vector<8x1xf32>
      %108 = arith.subf %106, %107 : vector<8x1xf32>
      %109 = vector.broadcast %101 : vector<8x1xf32> to vector<8x128xf32>
      %110 = arith.subf %95, %109 : vector<8x128xf32>
      %cst_54 = arith.constant 9.99999974E-6 : f32
      %111 = vector.broadcast %cst_54 : f32 to vector<8x1xf32>
      %112 = arith.addf %108, %111 : vector<8x1xf32>
      %113 = math.rsqrt %112 : vector<8x1xf32>
      %114 = vector.broadcast %113 : vector<8x1xf32> to vector<8x128xf32>
      %115 = arith.mulf %110, %114 : vector<8x128xf32>
      %116 = vector.broadcast %96 : vector<1x128xf32> to vector<8x128xf32>
      %117 = arith.mulf %115, %116 : vector<8x128xf32>
      %118 = vector.broadcast %97 : vector<1x128xf32> to vector<8x128xf32>
      %119 = arith.addf %117, %118 : vector<8x128xf32>
      %cst_55 = arith.constant 5.000000e-01 : f32
      %120 = vector.broadcast %cst_55 : f32 to vector<8x128xf32>
      %121 = arith.mulf %120, %119 : vector<8x128xf32>
      %cst_56 = arith.constant 0.707106769 : f32
      %122 = vector.broadcast %cst_56 : f32 to vector<8x128xf32>
      %123 = arith.mulf %119, %122 : vector<8x128xf32>
      %cst_57 = arith.constant 0.000000e+00 : f32
      %124 = vector.broadcast %cst_57 : f32 to vector<8x128xf32>
      %125 = arith.cmpf olt, %123, %124 : vector<8x128xf32>
      %cst_58 = arith.constant -1.000000e+00 : f32
      %cst_59 = arith.constant 1.000000e+00 : f32
      %126 = vector.broadcast %cst_58 : f32 to vector<8x128xf32>
      %127 = vector.broadcast %cst_59 : f32 to vector<8x128xf32>
      %128 = arith.select %125, %126, %127 : vector<8x128xi1>, vector<8x128xf32>
      %129 = math.absf %123 : vector<8x128xf32>
      %cst_60 = arith.constant 0.327591091 : f32
      %130 = vector.broadcast %cst_60 : f32 to vector<8x128xf32>
      %131 = arith.mulf %130, %129 : vector<8x128xf32>
      %cst_61 = arith.constant 1.000000e+00 : f32
      %132 = vector.broadcast %cst_61 : f32 to vector<8x128xf32>
      %133 = arith.addf %132, %131 : vector<8x128xf32>
      %134 = tpu.reciprocal %133 {approx = true} : vector<8x128xf32> -> vector<8x128xf32>
      %135 = arith.mulf %133, %134 : vector<8x128xf32>
      %cst_62 = arith.constant 2.000000e+00 : f32
      %136 = vector.broadcast %cst_62 : f32 to vector<8x128xf32>
      %137 = arith.subf %136, %135 : vector<8x128xf32>
      %138 = arith.mulf %134, %137 : vector<8x128xf32>
      %cst_63 = arith.constant 1.06140542 : f32
      %139 = vector.broadcast %cst_63 : f32 to vector<8x128xf32>
      %140 = arith.mulf %139, %138 : vector<8x128xf32>
      %cst_64 = arith.constant -1.45315206 : f32
      %141 = vector.broadcast %cst_64 : f32 to vector<8x128xf32>
      %142 = arith.addf %140, %141 : vector<8x128xf32>
      %143 = arith.mulf %142, %138 : vector<8x128xf32>
      %cst_65 = arith.constant 1.42141378 : f32
      %144 = vector.broadcast %cst_65 : f32 to vector<8x128xf32>
      %145 = arith.addf %143, %144 : vector<8x128xf32>
      %146 = arith.mulf %145, %138 : vector<8x128xf32>
      %cst_66 = arith.constant -0.284496725 : f32
      %147 = vector.broadcast %cst_66 : f32 to vector<8x128xf32>
      %148 = arith.addf %146, %147 : vector<8x128xf32>
      %149 = arith.mulf %148, %138 : vector<8x128xf32>
      %cst_67 = arith.constant 0.254829586 : f32
      %150 = vector.broadcast %cst_67 : f32 to vector<8x128xf32>
      %151 = arith.addf %149, %150 : vector<8x128xf32>
      %152 = arith.mulf %151, %138 : vector<8x128xf32>
      %cst_68 = arith.constant 0.000000e+00 : f32
      %153 = vector.broadcast %cst_68 : f32 to vector<8x128xf32>
      %154 = arith.subf %153, %129 : vector<8x128xf32>
      %155 = arith.mulf %154, %129 : vector<8x128xf32>
      %156 = math.exp %155 : vector<8x128xf32>
      %157 = arith.mulf %152, %156 : vector<8x128xf32>
      %cst_69 = arith.constant 1.000000e+00 : f32
      %158 = vector.broadcast %cst_69 : f32 to vector<8x128xf32>
      %159 = arith.subf %158, %157 : vector<8x128xf32>
      %160 = arith.mulf %128, %159 : vector<8x128xf32>
      %cst_70 = arith.constant 1.000000e+00 : f32
      %161 = vector.broadcast %cst_70 : f32 to vector<8x128xf32>
      %162 = arith.addf %161, %160 : vector<8x128xf32>
      %163 = arith.mulf %121, %162 : vector<8x128xf32>
      %c0_71 = arith.constant 0 : index
      %c0_72 = arith.constant 0 : index
      %164 = vector.load %arg24[%c0_71, %c0_72] : memref<8x128xf32, #tpu.memory_space<vmem>>, vector<8x128xf32>
      tpu.vector_store %arg24[%c0_71, %c0_72], %163 {strides = array<i32>} : memref<8x128xf32, #tpu.memory_space<vmem>>, vector<8x128xf32>,
    } else {
    }
    %c2_i32 = arith.constant 2 : i32
    %13 = arith.cmpi eq, %arg0, %c2_i32 : i32
    %14 = arith.extui %13 : i1 to i32
    %c0_i32_8 = arith.constant 0 : i32
    %15 = arith.cmpi ne, %14, %c0_i32_8 : i32
    scf.if %15 {
      %c0_9 = arith.constant 0 : index
      %c0_10 = arith.constant 0 : index
      %c0_11 = arith.constant 0 : index
      %16 = vector.load %arg23[%c0_9, %c0_10, %c0_11] : memref<3x8x128xf32, #tpu.memory_space<vmem>>, vector<1x8x128xf32>
      %17 = vector.shape_cast %16 : vector<1x8x128xf32> to vector<8x128xf32>
      %c1 = arith.constant 1 : index
      %c0_12 = arith.constant 0 : index
      %c0_13 = arith.constant 0 : index
      %18 = vector.load %arg23[%c1, %c0_12, %c0_13] : memref<3x8x128xf32, #tpu.memory_space<vmem>>, vector<1x8x128xf32>
      %19 = vector.shape_cast %18 : vector<1x8x128xf32> to vector<8x128xf32>
      %c2 = arith.constant 2 : index
      %c0_14 = arith.constant 0 : index
      %c0_15 = arith.constant 0 : index
      %20 = vector.load %arg23[%c2, %c0_14, %c0_15] : memref<3x8x128xf32, #tpu.memory_space<vmem>>, vector<1x8x128xf32>
      %21 = vector.shape_cast %20 : vector<1x8x128xf32> to vector<8x128xf32>
      %c0_16 = arith.constant 0 : index
      %c0_17 = arith.constant 0 : index
      %22 = vector.load %arg3[%c0_16, %c0_17] : memref<1x8xf32, #tpu.memory_space<vmem>>, vector<1x8xf32>
      %23 = vector.extract_strided_slice %17 {offsets = [0, 0], sizes = [8, 16], strides = [1, 1]} : vector<8x128xf32> to vector<8x16xf32>
      %24 = arith.truncf %23 : vector<8x16xf32> to vector<8x16xbf16>
      %25 = vector.extract_strided_slice %19 {offsets = [0, 0], sizes = [8, 16], strides = [1, 1]} : vector<8x128xf32> to vector<8x16xf32>
      %26 = arith.truncf %25 : vector<8x16xf32> to vector<8x16xbf16>
      %27 = vector.extract_strided_slice %21 {offsets = [0, 0], sizes = [8, 16], strides = [1, 1]} : vector<8x128xf32> to vector<8x16xf32>
      %28 = arith.truncf %27 : vector<8x16xf32> to vector<8x16xbf16>
      %cst_18 = arith.constant dense<0.000000e+00> : vector<8x8xf32>
      %29 = tpu.matmul %24, %26, %cst_18 {dimension_numbers = #tpu.dot_dimension_numbers<[1], [1], [0], [0], [0, 0, 1, 0], [], []>} : vector<8x16xbf16>, vector<8x16xbf16>, vector<8x8xf32> -> vector<8x8xf32>
      %cst_19 = arith.constant 2.500000e-01 : f32
      %30 = vector.broadcast %cst_19 : f32 to vector<8x8xf32>
      %31 = arith.mulf %29, %30 : vector<8x8xf32>
      %32 = vector.broadcast %22 : vector<1x8xf32> to vector<8x8xf32>
      %33 = arith.addf %31, %32 : vector<8x8xf32>
      %cst_20 = arith.constant dense<0xFF800000> : vector<8xf32>
      %34 = vector.multi_reduction <maximumf>, %33, %cst_20 [1] : vector<8x8xf32> to vector<8xf32>
      %35 = vector.shape_cast %34 : vector<8xf32> to vector<8x1xf32>
      %36 = vector.broadcast %35 : vector<8x1xf32> to vector<8x8xf32>
      %37 = arith.subf %33, %36 : vector<8x8xf32>
      %38 = math.exp %37 : vector<8x8xf32>
      %cst_21 = arith.constant dense<0.000000e+00> : vector<8xf32>
      %39 = vector.multi_reduction <add>, %38, %cst_21 [1] : vector<8x8xf32> to vector<8xf32>
      %40 = vector.shape_cast %39 : vector<8xf32> to vector<8x1xf32>
      %41 = tpu.reciprocal %40 {approx = true} : vector<8x1xf32> -> vector<8x1xf32>
      %42 = arith.mulf %40, %41 : vector<8x1xf32>
      %cst_22 = arith.constant 2.000000e+00 : f32
      %43 = vector.broadcast %cst_22 : f32 to vector<8x1xf32>
      %44 = arith.subf %43, %42 : vector<8x1xf32>
      %45 = arith.mulf %41, %44 : vector<8x1xf32>
      %46 = vector.broadcast %45 : vector<8x1xf32> to vector<8x8xf32>
      %47 = arith.mulf %38, %46 : vector<8x8xf32>
      %48 = arith.truncf %47 : vector<8x8xf32> to vector<8x8xbf16>
      %cst_23 = arith.constant dense<0.000000e+00> : vector<8x16xf32>
      %49 = tpu.matmul %48, %28, %cst_23 {dimension_numbers = #tpu.dot_dimension_numbers<[1], [0], [0], [1], [0, 0, 1, 1], [], []>} : vector<8x8xbf16>, vector<8x16xbf16>, vector<8x16xf32> -> vector<8x16xf32>
      %50 = vector.extract_strided_slice %17 {offsets = [0, 16], sizes = [8, 16], strides = [1, 1]} : vector<8x128xf32> to vector<8x16xf32>
      %51 = arith.truncf %50 : vector<8x16xf32> to vector<8x16xbf16>
      %52 = vector.extract_strided_slice %19 {offsets = [0, 16], sizes = [8, 16], strides = [1, 1]} : vector<8x128xf32> to vector<8x16xf32>
      %53 = arith.truncf %52 : vector<8x16xf32> to vector<8x16xbf16>
      %54 = vector.extract_strided_slice %21 {offsets = [0, 16], sizes = [8, 16], strides = [1, 1]} : vector<8x128xf32> to vector<8x16xf32>
      %55 = arith.truncf %54 : vector<8x16xf32> to vector<8x16xbf16>
      %cst_24 = arith.constant dense<0.000000e+00> : vector<8x8xf32>
      %56 = tpu.matmul %51, %53, %cst_24 {dimension_numbers = #tpu.dot_dimension_numbers<[1], [1], [0], [0], [0, 0, 1, 0], [], []>} : vector<8x16xbf16>, vector<8x16xbf16>, vector<8x8xf32> -> vector<8x8xf32>
      %cst_25 = arith.constant 2.500000e-01 : f32
      %57 = vector.broadcast %cst_25 : f32 to vector<8x8xf32>
      %58 = arith.mulf %56, %57 : vector<8x8xf32>
      %59 = vector.broadcast %22 : vector<1x8xf32> to vector<8x8xf32>
      %60 = arith.addf %58, %59 : vector<8x8xf32>
      %cst_26 = arith.constant dense<0xFF800000> : vector<8xf32>
      %61 = vector.multi_reduction <maximumf>, %60, %cst_26 [1] : vector<8x8xf32> to vector<8xf32>
      %62 = vector.shape_cast %61 : vector<8xf32> to vector<8x1xf32>
      %63 = vector.broadcast %62 : vector<8x1xf32> to vector<8x8xf32>
      %64 = arith.subf %60, %63 : vector<8x8xf32>
      %65 = math.exp %64 : vector<8x8xf32>
      %cst_27 = arith.constant dense<0.000000e+00> : vector<8xf32>
      %66 = vector.multi_reduction <add>, %65, %cst_27 [1] : vector<8x8xf32> to vector<8xf32>
      %67 = vector.shape_cast %66 : vector<8xf32> to vector<8x1xf32>
      %68 = tpu.reciprocal %67 {approx = true} : vector<8x1xf32> -> vector<8x1xf32>
      %69 = arith.mulf %67, %68 : vector<8x1xf32>
      %cst_28 = arith.constant 2.000000e+00 : f32
      %70 = vector.broadcast %cst_28 : f32 to vector<8x1xf32>
      %71 = arith.subf %70, %69 : vector<8x1xf32>
      %72 = arith.mulf %68, %71 : vector<8x1xf32>
      %73 = vector.broadcast %72 : vector<8x1xf32> to vector<8x8xf32>
      %74 = arith.mulf %65, %73 : vector<8x8xf32>
      %75 = arith.truncf %74 : vector<8x8xf32> to vector<8x8xbf16>
      %cst_29 = arith.constant dense<0.000000e+00> : vector<8x16xf32>
      %76 = tpu.matmul %75, %55, %cst_29 {dimension_numbers = #tpu.dot_dimension_numbers<[1], [0], [0], [1], [0, 0, 1, 1], [], []>} : vector<8x8xbf16>, vector<8x16xbf16>, vector<8x16xf32> -> vector<8x16xf32>
      %77 = vector.extract_strided_slice %17 {offsets = [0, 32], sizes = [8, 16], strides = [1, 1]} : vector<8x128xf32> to vector<8x16xf32>
      %78 = arith.truncf %77 : vector<8x16xf32> to vector<8x16xbf16>
      %79 = vector.extract_strided_slice %19 {offsets = [0, 32], sizes = [8, 16], strides = [1, 1]} : vector<8x128xf32> to vector<8x16xf32>
      %80 = arith.truncf %79 : vector<8x16xf32> to vector<8x16xbf16>
      %81 = vector.extract_strided_slice %21 {offsets = [0, 32], sizes = [8, 16], strides = [1, 1]} : vector<8x128xf32> to vector<8x16xf32>
      %82 = arith.truncf %81 : vector<8x16xf32> to vector<8x16xbf16>
      %cst_30 = arith.constant dense<0.000000e+00> : vector<8x8xf32>
      %83 = tpu.matmul %78, %80, %cst_30 {dimension_numbers = #tpu.dot_dimension_numbers<[1], [1], [0], [0], [0, 0, 1, 0], [], []>} : vector<8x16xbf16>, vector<8x16xbf16>, vector<8x8xf32> -> vector<8x8xf32>
      %cst_31 = arith.constant 2.500000e-01 : f32
      %84 = vector.broadcast %cst_31 : f32 to vector<8x8xf32>
      %85 = arith.mulf %83, %84 : vector<8x8xf32>
      %86 = vector.broadcast %22 : vector<1x8xf32> to vector<8x8xf32>
      %87 = arith.addf %85, %86 : vector<8x8xf32>
      %cst_32 = arith.constant dense<0xFF800000> : vector<8xf32>
      %88 = vector.multi_reduction <maximumf>, %87, %cst_32 [1] : vector<8x8xf32> to vector<8xf32>
      %89 = vector.shape_cast %88 : vector<8xf32> to vector<8x1xf32>
      %90 = vector.broadcast %89 : vector<8x1xf32> to vector<8x8xf32>
      %91 = arith.subf %87, %90 : vector<8x8xf32>
      %92 = math.exp %91 : vector<8x8xf32>
      %cst_33 = arith.constant dense<0.000000e+00> : vector<8xf32>
      %93 = vector.multi_reduction <add>, %92, %cst_33 [1] : vector<8x8xf32> to vector<8xf32>
      %94 = vector.shape_cast %93 : vector<8xf32> to vector<8x1xf32>
      %95 = tpu.reciprocal %94 {approx = true} : vector<8x1xf32> -> vector<8x1xf32>
      %96 = arith.mulf %94, %95 : vector<8x1xf32>
      %cst_34 = arith.constant 2.000000e+00 : f32
      %97 = vector.broadcast %cst_34 : f32 to vector<8x1xf32>
      %98 = arith.subf %97, %96 : vector<8x1xf32>
      %99 = arith.mulf %95, %98 : vector<8x1xf32>
      %100 = vector.broadcast %99 : vector<8x1xf32> to vector<8x8xf32>
      %101 = arith.mulf %92, %100 : vector<8x8xf32>
      %102 = arith.truncf %101 : vector<8x8xf32> to vector<8x8xbf16>
      %cst_35 = arith.constant dense<0.000000e+00> : vector<8x16xf32>
      %103 = tpu.matmul %102, %82, %cst_35 {dimension_numbers = #tpu.dot_dimension_numbers<[1], [0], [0], [1], [0, 0, 1, 1], [], []>} : vector<8x8xbf16>, vector<8x16xbf16>, vector<8x16xf32> -> vector<8x16xf32>
      %104 = vector.extract_strided_slice %17 {offsets = [0, 48], sizes = [8, 16], strides = [1, 1]} : vector<8x128xf32> to vector<8x16xf32>
      %105 = arith.truncf %104 : vector<8x16xf32> to vector<8x16xbf16>
      %106 = vector.extract_strided_slice %19 {offsets = [0, 48], sizes = [8, 16], strides = [1, 1]} : vector<8x128xf32> to vector<8x16xf32>
      %107 = arith.truncf %106 : vector<8x16xf32> to vector<8x16xbf16>
      %108 = vector.extract_strided_slice %21 {offsets = [0, 48], sizes = [8, 16], strides = [1, 1]} : vector<8x128xf32> to vector<8x16xf32>
      %109 = arith.truncf %108 : vector<8x16xf32> to vector<8x16xbf16>
      %cst_36 = arith.constant dense<0.000000e+00> : vector<8x8xf32>
      %110 = tpu.matmul %105, %107, %cst_36 {dimension_numbers = #tpu.dot_dimension_numbers<[1], [1], [0], [0], [0, 0, 1, 0], [], []>} : vector<8x16xbf16>, vector<8x16xbf16>, vector<8x8xf32> -> vector<8x8xf32>
      %cst_37 = arith.constant 2.500000e-01 : f32
      %111 = vector.broadcast %cst_37 : f32 to vector<8x8xf32>
      %112 = arith.mulf %110, %111 : vector<8x8xf32>
      %113 = vector.broadcast %22 : vector<1x8xf32> to vector<8x8xf32>
      %114 = arith.addf %112, %113 : vector<8x8xf32>
      %cst_38 = arith.constant dense<0xFF800000> : vector<8xf32>
      %115 = vector.multi_reduction <maximumf>, %114, %cst_38 [1] : vector<8x8xf32> to vector<8xf32>
      %116 = vector.shape_cast %115 : vector<8xf32> to vector<8x1xf32>
      %117 = vector.broadcast %116 : vector<8x1xf32> to vector<8x8xf32>
      %118 = arith.subf %114, %117 : vector<8x8xf32>
      %119 = math.exp %118 : vector<8x8xf32>
      %cst_39 = arith.constant dense<0.000000e+00> : vector<8xf32>
      %120 = vector.multi_reduction <add>, %119, %cst_39 [1] : vector<8x8xf32> to vector<8xf32>
      %121 = vector.shape_cast %120 : vector<8xf32> to vector<8x1xf32>
      %122 = tpu.reciprocal %121 {approx = true} : vector<8x1xf32> -> vector<8x1xf32>
      %123 = arith.mulf %121, %122 : vector<8x1xf32>
      %cst_40 = arith.constant 2.000000e+00 : f32
      %124 = vector.broadcast %cst_40 : f32 to vector<8x1xf32>
      %125 = arith.subf %124, %123 : vector<8x1xf32>
      %126 = arith.mulf %122, %125 : vector<8x1xf32>
      %127 = vector.broadcast %126 : vector<8x1xf32> to vector<8x8xf32>
      %128 = arith.mulf %119, %127 : vector<8x8xf32>
      %129 = arith.truncf %128 : vector<8x8xf32> to vector<8x8xbf16>
      %cst_41 = arith.constant dense<0.000000e+00> : vector<8x16xf32>
      %130 = tpu.matmul %129, %109, %cst_41 {dimension_numbers = #tpu.dot_dimension_numbers<[1], [0], [0], [1], [0, 0, 1, 1], [], []>} : vector<8x8xbf16>, vector<8x16xbf16>, vector<8x16xf32> -> vector<8x16xf32>
      %131 = vector.extract_strided_slice %17 {offsets = [0, 64], sizes = [8, 16], strides = [1, 1]} : vector<8x128xf32> to vector<8x16xf32>
      %132 = arith.truncf %131 : vector<8x16xf32> to vector<8x16xbf16>
      %133 = vector.extract_strided_slice %19 {offsets = [0, 64], sizes = [8, 16], strides = [1, 1]} : vector<8x128xf32> to vector<8x16xf32>
      %134 = arith.truncf %133 : vector<8x16xf32> to vector<8x16xbf16>
      %135 = vector.extract_strided_slice %21 {offsets = [0, 64], sizes = [8, 16], strides = [1, 1]} : vector<8x128xf32> to vector<8x16xf32>
      %136 = arith.truncf %135 : vector<8x16xf32> to vector<8x16xbf16>
      %cst_42 = arith.constant dense<0.000000e+00> : vector<8x8xf32>
      %137 = tpu.matmul %132, %134, %cst_42 {dimension_numbers = #tpu.dot_dimension_numbers<[1], [1], [0], [0], [0, 0, 1, 0], [], []>} : vector<8x16xbf16>, vector<8x16xbf16>, vector<8x8xf32> -> vector<8x8xf32>
      %cst_43 = arith.constant 2.500000e-01 : f32
      %138 = vector.broadcast %cst_43 : f32 to vector<8x8xf32>
      %139 = arith.mulf %137, %138 : vector<8x8xf32>
      %140 = vector.broadcast %22 : vector<1x8xf32> to vector<8x8xf32>
      %141 = arith.addf %139, %140 : vector<8x8xf32>
      %cst_44 = arith.constant dense<0xFF800000> : vector<8xf32>
      %142 = vector.multi_reduction <maximumf>, %141, %cst_44 [1] : vector<8x8xf32> to vector<8xf32>
      %143 = vector.shape_cast %142 : vector<8xf32> to vector<8x1xf32>
      %144 = vector.broadcast %143 : vector<8x1xf32> to vector<8x8xf32>
      %145 = arith.subf %141, %144 : vector<8x8xf32>
      %146 = math.exp %145 : vector<8x8xf32>
      %cst_45 = arith.constant dense<0.000000e+00> : vector<8xf32>
      %147 = vector.multi_reduction <add>, %146, %cst_45 [1] : vector<8x8xf32> to vector<8xf32>
      %148 = vector.shape_cast %147 : vector<8xf32> to vector<8x1xf32>
      %149 = tpu.reciprocal %148 {approx = true} : vector<8x1xf32> -> vector<8x1xf32>
      %150 = arith.mulf %148, %149 : vector<8x1xf32>
      %cst_46 = arith.constant 2.000000e+00 : f32
      %151 = vector.broadcast %cst_46 : f32 to vector<8x1xf32>
      %152 = arith.subf %151, %150 : vector<8x1xf32>
      %153 = arith.mulf %149, %152 : vector<8x1xf32>
      %154 = vector.broadcast %153 : vector<8x1xf32> to vector<8x8xf32>
      %155 = arith.mulf %146, %154 : vector<8x8xf32>
      %156 = arith.truncf %155 : vector<8x8xf32> to vector<8x8xbf16>
      %cst_47 = arith.constant dense<0.000000e+00> : vector<8x16xf32>
      %157 = tpu.matmul %156, %136, %cst_47 {dimension_numbers = #tpu.dot_dimension_numbers<[1], [0], [0], [1], [0, 0, 1, 1], [], []>} : vector<8x8xbf16>, vector<8x16xbf16>, vector<8x16xf32> -> vector<8x16xf32>
      %158 = vector.extract_strided_slice %17 {offsets = [0, 80], sizes = [8, 16], strides = [1, 1]} : vector<8x128xf32> to vector<8x16xf32>
      %159 = arith.truncf %158 : vector<8x16xf32> to vector<8x16xbf16>
      %160 = vector.extract_strided_slice %19 {offsets = [0, 80], sizes = [8, 16], strides = [1, 1]} : vector<8x128xf32> to vector<8x16xf32>
      %161 = arith.truncf %160 : vector<8x16xf32> to vector<8x16xbf16>
      %162 = vector.extract_strided_slice %21 {offsets = [0, 80], sizes = [8, 16], strides = [1, 1]} : vector<8x128xf32> to vector<8x16xf32>
      %163 = arith.truncf %162 : vector<8x16xf32> to vector<8x16xbf16>
      %cst_48 = arith.constant dense<0.000000e+00> : vector<8x8xf32>
      %164 = tpu.matmul %159, %161, %cst_48 {dimension_numbers = #tpu.dot_dimension_numbers<[1], [1], [0], [0], [0, 0, 1, 0], [], []>} : vector<8x16xbf16>, vector<8x16xbf16>, vector<8x8xf32> -> vector<8x8xf32>
      %cst_49 = arith.constant 2.500000e-01 : f32
      %165 = vector.broadcast %cst_49 : f32 to vector<8x8xf32>
      %166 = arith.mulf %164, %165 : vector<8x8xf32>
      %167 = vector.broadcast %22 : vector<1x8xf32> to vector<8x8xf32>
      %168 = arith.addf %166, %167 : vector<8x8xf32>
      %cst_50 = arith.constant dense<0xFF800000> : vector<8xf32>
      %169 = vector.multi_reduction <maximumf>, %168, %cst_50 [1] : vector<8x8xf32> to vector<8xf32>
      %170 = vector.shape_cast %169 : vector<8xf32> to vector<8x1xf32>
      %171 = vector.broadcast %170 : vector<8x1xf32> to vector<8x8xf32>
      %172 = arith.subf %168, %171 : vector<8x8xf32>
      %173 = math.exp %172 : vector<8x8xf32>
      %cst_51 = arith.constant dense<0.000000e+00> : vector<8xf32>
      %174 = vector.multi_reduction <add>, %173, %cst_51 [1] : vector<8x8xf32> to vector<8xf32>
      %175 = vector.shape_cast %174 : vector<8xf32> to vector<8x1xf32>
      %176 = tpu.reciprocal %175 {approx = true} : vector<8x1xf32> -> vector<8x1xf32>
      %177 = arith.mulf %175, %176 : vector<8x1xf32>
      %cst_52 = arith.constant 2.000000e+00 : f32
      %178 = vector.broadcast %cst_52 : f32 to vector<8x1xf32>
      %179 = arith.subf %178, %177 : vector<8x1xf32>
      %180 = arith.mulf %176, %179 : vector<8x1xf32>
      %181 = vector.broadcast %180 : vector<8x1xf32> to vector<8x8xf32>
      %182 = arith.mulf %173, %181 : vector<8x8xf32>
      %183 = arith.truncf %182 : vector<8x8xf32> to vector<8x8xbf16>
      %cst_53 = arith.constant dense<0.000000e+00> : vector<8x16xf32>
      %184 = tpu.matmul %183, %163, %cst_53 {dimension_numbers = #tpu.dot_dimension_numbers<[1], [0], [0], [1], [0, 0, 1, 1], [], []>} : vector<8x8xbf16>, vector<8x16xbf16>, vector<8x16xf32> -> vector<8x16xf32>
      %185 = vector.extract_strided_slice %17 {offsets = [0, 96], sizes = [8, 16], strides = [1, 1]} : vector<8x128xf32> to vector<8x16xf32>
      %186 = arith.truncf %185 : vector<8x16xf32> to vector<8x16xbf16>
      %187 = vector.extract_strided_slice %19 {offsets = [0, 96], sizes = [8, 16], strides = [1, 1]} : vector<8x128xf32> to vector<8x16xf32>
      %188 = arith.truncf %187 : vector<8x16xf32> to vector<8x16xbf16>
      %189 = vector.extract_strided_slice %21 {offsets = [0, 96], sizes = [8, 16], strides = [1, 1]} : vector<8x128xf32> to vector<8x16xf32>
      %190 = arith.truncf %189 : vector<8x16xf32> to vector<8x16xbf16>
      %cst_54 = arith.constant dense<0.000000e+00> : vector<8x8xf32>
      %191 = tpu.matmul %186, %188, %cst_54 {dimension_numbers = #tpu.dot_dimension_numbers<[1], [1], [0], [0], [0, 0, 1, 0], [], []>} : vector<8x16xbf16>, vector<8x16xbf16>, vector<8x8xf32> -> vector<8x8xf32>
      %cst_55 = arith.constant 2.500000e-01 : f32
      %192 = vector.broadcast %cst_55 : f32 to vector<8x8xf32>
      %193 = arith.mulf %191, %192 : vector<8x8xf32>
      %194 = vector.broadcast %22 : vector<1x8xf32> to vector<8x8xf32>
      %195 = arith.addf %193, %194 : vector<8x8xf32>
      %cst_56 = arith.constant dense<0xFF800000> : vector<8xf32>
      %196 = vector.multi_reduction <maximumf>, %195, %cst_56 [1] : vector<8x8xf32> to vector<8xf32>
      %197 = vector.shape_cast %196 : vector<8xf32> to vector<8x1xf32>
      %198 = vector.broadcast %197 : vector<8x1xf32> to vector<8x8xf32>
      %199 = arith.subf %195, %198 : vector<8x8xf32>
      %200 = math.exp %199 : vector<8x8xf32>
      %cst_57 = arith.constant dense<0.000000e+00> : vector<8xf32>
      %201 = vector.multi_reduction <add>, %200, %cst_57 [1] : vector<8x8xf32> to vector<8xf32>
      %202 = vector.shape_cast %201 : vector<8xf32> to vector<8x1xf32>
      %203 = tpu.reciprocal %202 {approx = true} : vector<8x1xf32> -> vector<8x1xf32>
      %204 = arith.mulf %202, %203 : vector<8x1xf32>
      %cst_58 = arith.constant 2.000000e+00 : f32
      %205 = vector.broadcast %cst_58 : f32 to vector<8x1xf32>
      %206 = arith.subf %205, %204 : vector<8x1xf32>
      %207 = arith.mulf %203, %206 : vector<8x1xf32>
      %208 = vector.broadcast %207 : vector<8x1xf32> to vector<8x8xf32>
      %209 = arith.mulf %200, %208 : vector<8x8xf32>
      %210 = arith.truncf %209 : vector<8x8xf32> to vector<8x8xbf16>
      %cst_59 = arith.constant dense<0.000000e+00> : vector<8x16xf32>
      %211 = tpu.matmul %210, %190, %cst_59 {dimension_numbers = #tpu.dot_dimension_numbers<[1], [0], [0], [1], [0, 0, 1, 1], [], []>} : vector<8x8xbf16>, vector<8x16xbf16>, vector<8x16xf32> -> vector<8x16xf32>
      %212 = vector.extract_strided_slice %17 {offsets = [0, 112], sizes = [8, 16], strides = [1, 1]} : vector<8x128xf32> to vector<8x16xf32>
      %213 = arith.truncf %212 : vector<8x16xf32> to vector<8x16xbf16>
      %214 = vector.extract_strided_slice %19 {offsets = [0, 112], sizes = [8, 16], strides = [1, 1]} : vector<8x128xf32> to vector<8x16xf32>
      %215 = arith.truncf %214 : vector<8x16xf32> to vector<8x16xbf16>
      %216 = vector.extract_strided_slice %21 {offsets = [0, 112], sizes = [8, 16], strides = [1, 1]} : vector<8x128xf32> to vector<8x16xf32>
      %217 = arith.truncf %216 : vector<8x16xf32> to vector<8x16xbf16>
      %cst_60 = arith.constant dense<0.000000e+00> : vector<8x8xf32>
      %218 = tpu.matmul %213, %215, %cst_60 {dimension_numbers = #tpu.dot_dimension_numbers<[1], [1], [0], [0], [0, 0, 1, 0], [], []>} : vector<8x16xbf16>, vector<8x16xbf16>, vector<8x8xf32> -> vector<8x8xf32>
      %cst_61 = arith.constant 2.500000e-01 : f32
      %219 = vector.broadcast %cst_61 : f32 to vector<8x8xf32>
      %220 = arith.mulf %218, %219 : vector<8x8xf32>
      %221 = vector.broadcast %22 : vector<1x8xf32> to vector<8x8xf32>
      %222 = arith.addf %220, %221 : vector<8x8xf32>
      %cst_62 = arith.constant dense<0xFF800000> : vector<8xf32>
      %223 = vector.multi_reduction <maximumf>, %222, %cst_62 [1] : vector<8x8xf32> to vector<8xf32>
      %224 = vector.shape_cast %223 : vector<8xf32> to vector<8x1xf32>
      %225 = vector.broadcast %224 : vector<8x1xf32> to vector<8x8xf32>
      %226 = arith.subf %222, %225 : vector<8x8xf32>
      %227 = math.exp %226 : vector<8x8xf32>
      %cst_63 = arith.constant dense<0.000000e+00> : vector<8xf32>
      %228 = vector.multi_reduction <add>, %227, %cst_63 [1] : vector<8x8xf32> to vector<8xf32>
      %229 = vector.shape_cast %228 : vector<8xf32> to vector<8x1xf32>
      %230 = tpu.reciprocal %229 {approx = true} : vector<8x1xf32> -> vector<8x1xf32>
      %231 = arith.mulf %229, %230 : vector<8x1xf32>
      %cst_64 = arith.constant 2.000000e+00 : f32
      %232 = vector.broadcast %cst_64 : f32 to vector<8x1xf32>
      %233 = arith.subf %232, %231 : vector<8x1xf32>
      %234 = arith.mulf %230, %233 : vector<8x1xf32>
      %235 = vector.broadcast %234 : vector<8x1xf32> to vector<8x8xf32>
      %236 = arith.mulf %227, %235 : vector<8x8xf32>
      %237 = arith.truncf %236 : vector<8x8xf32> to vector<8x8xbf16>
      %cst_65 = arith.constant dense<0.000000e+00> : vector<8x16xf32>
      %238 = tpu.matmul %237, %217, %cst_65 {dimension_numbers = #tpu.dot_dimension_numbers<[1], [0], [0], [1], [0, 0, 1, 1], [], []>} : vector<8x8xbf16>, vector<8x16xbf16>, vector<8x16xf32> -> vector<8x16xf32>
      %239 = tpu.concatenate %49, %76, %103, %130, %157, %184, %211, %238 in 1 : vector<8x16xf32>, vector<8x16xf32>, vector<8x16xf32>, vector<8x16xf32>, vector<8x16xf32>, vector<8x16xf32>, vector<8x16xf32>, vector<8x16xf32> -> vector<8x128xf32>
      %240 = arith.truncf %239 : vector<8x128xf32> to vector<8x128xbf16>
      %c0_66 = arith.constant 0 : index
      %c0_67 = arith.constant 0 : index
      %241 = vector.load %arg14[%c0_66, %c0_67] : memref<128x128xbf16, #tpu.memory_space<vmem>>, vector<128x128xbf16>
      %cst_68 = arith.constant dense<0.000000e+00> : vector<8x128xf32>
      %242 = tpu.matmul %240, %241, %cst_68 {dimension_numbers = #tpu.dot_dimension_numbers<[1], [0], [0], [1], [0, 0, 1, 1], [], []>} : vector<8x128xbf16>, vector<128x128xbf16>, vector<8x128xf32> -> vector<8x128xf32>
      %c0_69 = arith.constant 0 : index
      %c0_70 = arith.constant 0 : index
      %243 = vector.load %arg15[%c0_69, %c0_70] : memref<1x128xf32, #tpu.memory_space<vmem>>, vector<1x128xf32>
      %244 = vector.broadcast %243 : vector<1x128xf32> to vector<8x128xf32>
      %245 = arith.addf %242, %244 : vector<8x128xf32>
      %c0_71 = arith.constant 0 : index
      %c0_72 = arith.constant 0 : index
      %246 = vector.load %arg24[%c0_71, %c0_72] : memref<8x128xf32, #tpu.memory_space<vmem>>, vector<8x128xf32>
      %247 = arith.addf %245, %246 : vector<8x128xf32>
      %248 = arith.truncf %247 : vector<8x128xf32> to vector<8x128xbf16>
      %c0_73 = arith.constant 0 : index
      %c0_74 = arith.constant 0 : index
      %249 = vector.load %arg16[%c0_73, %c0_74] : memref<128x128xbf16, #tpu.memory_space<vmem>>, vector<128x128xbf16>
      %cst_75 = arith.constant dense<0.000000e+00> : vector<8x128xf32>
      %250 = tpu.matmul %248, %249, %cst_75 {dimension_numbers = #tpu.dot_dimension_numbers<[1], [0], [0], [1], [0, 0, 1, 1], [], []>} : vector<8x128xbf16>, vector<128x128xbf16>, vector<8x128xf32> -> vector<8x128xf32>
      %c0_76 = arith.constant 0 : index
      %c0_77 = arith.constant 0 : index
      %251 = vector.load %arg17[%c0_76, %c0_77] : memref<1x128xf32, #tpu.memory_space<vmem>>, vector<1x128xf32>
      %252 = vector.broadcast %251 : vector<1x128xf32> to vector<8x128xf32>
      %253 = arith.addf %250, %252 : vector<8x128xf32>
      %c0_78 = arith.constant 0 : index
      %c0_79 = arith.constant 0 : index
      %254 = vector.load %arg18[%c0_78, %c0_79] : memref<1x128xf32, #tpu.memory_space<vmem>>, vector<1x128xf32>
      %c0_80 = arith.constant 0 : index
      %c0_81 = arith.constant 0 : index
      %255 = vector.load %arg19[%c0_80, %c0_81] : memref<1x128xf32, #tpu.memory_space<vmem>>, vector<1x128xf32>
      %cst_82 = arith.constant dense<0.000000e+00> : vector<8xf32>
      %256 = vector.multi_reduction <add>, %253, %cst_82 [1] : vector<8x128xf32> to vector<8xf32>
      %257 = vector.shape_cast %256 : vector<8xf32> to vector<8x1xf32>
      %cst_83 = arith.constant 1.280000e+02 : f32
      %258 = vector.broadcast %cst_83 : f32 to vector<8x1xf32>
      %259 = arith.divf %257, %258 : vector<8x1xf32>
      %260 = arith.mulf %253, %253 : vector<8x128xf32>
      %cst_84 = arith.constant dense<0.000000e+00> : vector<8xf32>
      %261 = vector.multi_reduction <add>, %260, %cst_84 [1] : vector<8x128xf32> to vector<8xf32>
      %262 = vector.shape_cast %261 : vector<8xf32> to vector<8x1xf32>
      %cst_85 = arith.constant 1.280000e+02 : f32
      %263 = vector.broadcast %cst_85 : f32 to vector<8x1xf32>
      %264 = arith.divf %262, %263 : vector<8x1xf32>
      %265 = arith.mulf %259, %259 : vector<8x1xf32>
      %266 = arith.subf %264, %265 : vector<8x1xf32>
      %267 = vector.broadcast %259 : vector<8x1xf32> to vector<8x128xf32>
      %268 = arith.subf %253, %267 : vector<8x128xf32>
      %cst_86 = arith.constant 9.99999974E-6 : f32
      %269 = vector.broadcast %cst_86 : f32 to vector<8x1xf32>
      %270 = arith.addf %266, %269 : vector<8x1xf32>
      %271 = math.rsqrt %270 : vector<8x1xf32>
      %272 = vector.broadcast %271 : vector<8x1xf32> to vector<8x128xf32>
      %273 = arith.mulf %268, %272 : vector<8x128xf32>
      %274 = vector.broadcast %254 : vector<1x128xf32> to vector<8x128xf32>
      %275 = arith.mulf %273, %274 : vector<8x128xf32>
      %276 = vector.broadcast %255 : vector<1x128xf32> to vector<8x128xf32>
      %277 = arith.addf %275, %276 : vector<8x128xf32>
      %cst_87 = arith.constant 5.000000e-01 : f32
      %278 = vector.broadcast %cst_87 : f32 to vector<8x128xf32>
      %279 = arith.mulf %278, %277 : vector<8x128xf32>
      %cst_88 = arith.constant 0.707106769 : f32
      %280 = vector.broadcast %cst_88 : f32 to vector<8x128xf32>
      %281 = arith.mulf %277, %280 : vector<8x128xf32>
      %cst_89 = arith.constant 0.000000e+00 : f32
      %282 = vector.broadcast %cst_89 : f32 to vector<8x128xf32>
      %283 = arith.cmpf olt, %281, %282 : vector<8x128xf32>
      %cst_90 = arith.constant -1.000000e+00 : f32
      %cst_91 = arith.constant 1.000000e+00 : f32
      %284 = vector.broadcast %cst_90 : f32 to vector<8x128xf32>
      %285 = vector.broadcast %cst_91 : f32 to vector<8x128xf32>
      %286 = arith.select %283, %284, %285 : vector<8x128xi1>, vector<8x128xf32>
      %287 = math.absf %281 : vector<8x128xf32>
      %cst_92 = arith.constant 0.327591091 : f32
      %288 = vector.broadcast %cst_92 : f32 to vector<8x128xf32>
      %289 = arith.mulf %288, %287 : vector<8x128xf32>
      %cst_93 = arith.constant 1.000000e+00 : f32
      %290 = vector.broadcast %cst_93 : f32 to vector<8x128xf32>
      %291 = arith.addf %290, %289 : vector<8x128xf32>
      %292 = tpu.reciprocal %291 {approx = true} : vector<8x128xf32> -> vector<8x128xf32>
      %293 = arith.mulf %291, %292 : vector<8x128xf32>
      %cst_94 = arith.constant 2.000000e+00 : f32
      %294 = vector.broadcast %cst_94 : f32 to vector<8x128xf32>
      %295 = arith.subf %294, %293 : vector<8x128xf32>
      %296 = arith.mulf %292, %295 : vector<8x128xf32>
      %cst_95 = arith.constant 1.06140542 : f32
      %297 = vector.broadcast %cst_95 : f32 to vector<8x128xf32>
      %298 = arith.mulf %297, %296 : vector<8x128xf32>
      %cst_96 = arith.constant -1.45315206 : f32
      %299 = vector.broadcast %cst_96 : f32 to vector<8x128xf32>
      %300 = arith.addf %298, %299 : vector<8x128xf32>
      %301 = arith.mulf %300, %296 : vector<8x128xf32>
      %cst_97 = arith.constant 1.42141378 : f32
      %302 = vector.broadcast %cst_97 : f32 to vector<8x128xf32>
      %303 = arith.addf %301, %302 : vector<8x128xf32>
      %304 = arith.mulf %303, %296 : vector<8x128xf32>
      %cst_98 = arith.constant -0.284496725 : f32
      %305 = vector.broadcast %cst_98 : f32 to vector<8x128xf32>
      %306 = arith.addf %304, %305 : vector<8x128xf32>
      %307 = arith.mulf %306, %296 : vector<8x128xf32>
      %cst_99 = arith.constant 0.254829586 : f32
      %308 = vector.broadcast %cst_99 : f32 to vector<8x128xf32>
      %309 = arith.addf %307, %308 : vector<8x128xf32>
      %310 = arith.mulf %309, %296 : vector<8x128xf32>
      %cst_100 = arith.constant 0.000000e+00 : f32
      %311 = vector.broadcast %cst_100 : f32 to vector<8x128xf32>
      %312 = arith.subf %311, %287 : vector<8x128xf32>
      %313 = arith.mulf %312, %287 : vector<8x128xf32>
      %314 = math.exp %313 : vector<8x128xf32>
      %315 = arith.mulf %310, %314 : vector<8x128xf32>
      %cst_101 = arith.constant 1.000000e+00 : f32
      %316 = vector.broadcast %cst_101 : f32 to vector<8x128xf32>
      %317 = arith.subf %316, %315 : vector<8x128xf32>
      %318 = arith.mulf %286, %317 : vector<8x128xf32>
      %cst_102 = arith.constant 1.000000e+00 : f32
      %319 = vector.broadcast %cst_102 : f32 to vector<8x128xf32>
      %320 = arith.addf %319, %318 : vector<8x128xf32>
      %321 = arith.mulf %279, %320 : vector<8x128xf32>
      %322 = arith.truncf %321 : vector<8x128xf32> to vector<8x128xbf16>
      %c0_103 = arith.constant 0 : index
      %c0_104 = arith.constant 0 : index
      %323 = vector.load %arg20[%c0_103, %c0_104] : memref<128x128xbf16, #tpu.memory_space<vmem>>, vector<128x128xbf16>
      %cst_105 = arith.constant dense<0.000000e+00> : vector<8x128xf32>
      %324 = tpu.matmul %322, %323, %cst_105 {dimension_numbers = #tpu.dot_dimension_numbers<[1], [0], [0], [1], [0, 0, 1, 1], [], []>} : vector<8x128xbf16>, vector<128x128xbf16>, vector<8x128xf32> -> vector<8x128xf32>
      %c0_106 = arith.constant 0 : index
      %c0_107 = arith.constant 0 : index
      %325 = vector.load %arg21[%c0_106, %c0_107] : memref<1x128xf32, #tpu.memory_space<vmem>>, vector<1x128xf32>
      %326 = vector.broadcast %325 : vector<1x128xf32> to vector<8x128xf32>
      %327 = arith.addf %324, %326 : vector<8x128xf32>
      %c0_108 = arith.constant 0 : index
      %c0_109 = arith.constant 0 : index
      %328 = vector.load %arg22[%c0_108, %c0_109] : memref<8x128xf32, #tpu.memory_space<vmem>>, vector<8x128xf32>
      tpu.vector_store %arg22[%c0_108, %c0_109], %327 {strides = array<i32>} : memref<8x128xf32, #tpu.memory_space<vmem>>, vector<8x128xf32>,
    } else {
    }
    return
  }
  func.func @transform_0(%arg0: i32) -> (i32, i32) {
    %c0_i32 = arith.constant 0 : i32
    %c0_i32_0 = arith.constant 0 : i32
    %c0_i32_1 = arith.constant 0 : i32
    return %c0_i32, %c0_i32_0 : i32, i32
  }
  func.func @transform_1(%arg0: i32) -> (i32, i32) {
    %c0_i32 = arith.constant 0 : i32
    %c0_i32_0 = arith.constant 0 : i32
    %c0_i32_1 = arith.constant 0 : i32
    return %c0_i32, %c0_i32_0 : i32, i32
  }
  func.func @transform_2(%arg0: i32) -> (i32, i32) {
    %c0_i32 = arith.constant 0 : i32
    %c0_i32_0 = arith.constant 0 : i32
    %c0_i32_1 = arith.constant 0 : i32
    return %c0_i32, %c0_i32_0 : i32, i32
  }
  func.func @transform_3(%arg0: i32) -> (i32, i32) {
    %c0_i32 = arith.constant 0 : i32
    %c0_i32_0 = arith.constant 0 : i32
    %c0_i32_1 = arith.constant 0 : i32
    return %c0_i32, %c0_i32_0 : i32, i32
  }
  func.func @transform_4(%arg0: i32) -> (i32, i32) {
    %c0_i32 = arith.constant 0 : i32
    %c0_i32_0 = arith.constant 0 : i32
    %c0_i32_1 = arith.constant 0 : i32
    return %c0_i32, %c0_i32_0 : i32, i32
  }
  func.func @transform_5(%arg0: i32) -> (i32, i32) {
    %c0_i32 = arith.constant 0 : i32
    %c0_i32_0 = arith.constant 0 : i32
    %c0_i32_1 = arith.constant 0 : i32
    return %c0_i32, %c0_i32_0 : i32, i32
  }
  func.func @transform_6(%arg0: i32) -> (i32, i32) {
    %c0_i32 = arith.constant 0 : i32
    %c0_i32_0 = arith.constant 0 : i32
    %c0_i32_1 = arith.constant 0 : i32
    return %c0_i32, %c0_i32_0 : i32, i32
  }
  func.func @transform_7(%arg0: i32) -> (i32, i32) {
    %c0_i32 = arith.constant 0 : i32
    %c0_i32_0 = arith.constant 0 : i32
    %c0_i32_1 = arith.constant 0 : i32
    return %c0_i32, %c0_i32_0 : i32, i32
  }
  func.func @transform_8(%arg0: i32) -> (i32, i32) {
    %c0_i32 = arith.constant 0 : i32
    %c0_i32_0 = arith.constant 0 : i32
    %c0_i32_1 = arith.constant 0 : i32
    return %c0_i32, %c0_i32_0 : i32, i32
  }
  func.func @transform_9(%arg0: i32) -> (i32, i32) {
    %c0_i32 = arith.constant 0 : i32
    %c0_i32_0 = arith.constant 0 : i32
    %c0_i32_1 = arith.constant 0 : i32
    return %c0_i32, %c0_i32_0 : i32, i32
  }
  func.func @transform_10(%arg0: i32) -> (i32, i32) {
    %c0_i32 = arith.constant 0 : i32
    %c0_i32_0 = arith.constant 0 : i32
    %c0_i32_1 = arith.constant 0 : i32
    return %c0_i32, %c0_i32_0 : i32, i32
  }
  func.func @transform_11(%arg0: i32) -> (i32, i32) {
    %c0_i32 = arith.constant 0 : i32
    %c0_i32_0 = arith.constant 0 : i32
    return %c0_i32, %arg0 : i32, i32
  }
  func.func @transform_12(%arg0: i32) -> (i32, i32) {
    %c0_i32 = arith.constant 0 : i32
    %c0_i32_0 = arith.constant 0 : i32
    return %c0_i32, %arg0 : i32, i32
  }
  func.func @transform_13(%arg0: i32) -> (i32, i32) {
    %c0_i32 = arith.constant 0 : i32
    %c0_i32_0 = arith.constant 0 : i32
    %c0_i32_1 = arith.constant 0 : i32
    return %c0_i32, %c0_i32_0 : i32, i32
  }
  func.func @transform_14(%arg0: i32) -> (i32, i32) {
    %c0_i32 = arith.constant 0 : i32
    %c0_i32_0 = arith.constant 0 : i32
    %c0_i32_1 = arith.constant 0 : i32
    return %c0_i32, %c0_i32_0 : i32, i32
  }
  func.func @transform_15(%arg0: i32) -> (i32, i32) {
    %c0_i32 = arith.constant 0 : i32
    %c0_i32_0 = arith.constant 0 : i32
    %c0_i32_1 = arith.constant 0 : i32
    return %c0_i32, %c0_i32_0 : i32, i32
  }
  func.func @transform_16(%arg0: i32) -> (i32, i32) {
    %c0_i32 = arith.constant 0 : i32
    %c0_i32_0 = arith.constant 0 : i32
    %c0_i32_1 = arith.constant 0 : i32
    return %c0_i32, %c0_i32_0 : i32, i32
  }
  func.func @transform_17(%arg0: i32) -> (i32, i32) {
    %c0_i32 = arith.constant 0 : i32
    %c0_i32_0 = arith.constant 0 : i32
    %c0_i32_1 = arith.constant 0 : i32
    return %c0_i32, %c0_i32_0 : i32, i32
  }
  func.func @transform_18(%arg0: i32) -> (i32, i32) {
    %c0_i32 = arith.constant 0 : i32
    %c0_i32_0 = arith.constant 0 : i32
    %c0_i32_1 = arith.constant 0 : i32
    return %c0_i32, %c0_i32_0 : i32, i32
  }
  func.func @transform_19(%arg0: i32) -> (i32, i32) {
    %c0_i32 = arith.constant 0 : i32
    %c0_i32_0 = arith.constant 0 : i32
    %c0_i32_1 = arith.constant 0 : i32
    return %c0_i32, %c0_i32_0 : i32, i32
  }
  func.func @transform_20(%arg0: i32) -> (i32, i32) {
    %c0_i32 = arith.constant 0 : i32
    %c0_i32_0 = arith.constant 0 : i32
    %c0_i32_1 = arith.constant 0 : i32
    return %c0_i32, %c0_i32_0 : i32, i32
  }
  func.func @transform_21(%arg0: i32) -> (i32, i32) {
    %c0_i32 = arith.constant 0 : i32
    %c0_i32_0 = arith.constant 0 : i32
    %c0_i32_1 = arith.constant 0 : i32
    return %c0_i32, %c0_i32_0 : i32, i32
  }
}

</mosaic_0001>

<bundles_post_ra>
// kernel: forward.1
= control target key start
LH: loop header
LB: loop body
LE: loop exit
PB: predicated region body
PF: predicated region fallthrough
CT: control target
= control target key end

     0   :  { %s4268_s0 = inlined_call_operand.vmem [shape: bf16[8,16], index: 0, kind: input, shape index: {}]   ;;  %s4269_s1 = inlined_call_operand.vmem [shape: bf16[8,128], index: 1, kind: input, shape index: {}]   ;;  %s4270_s2 = inlined_call_operand.vmem [shape: f32[1,8], index: 2, kind: input, shape index: {}]   ;;  %s4271_s3 = inlined_call_operand.hbm [shape: bf16[16,256], index: 3, kind: input, shape index: {}]   ;;  %s4272_s4 = inlined_call_operand.vmem [shape: f32[1,256], index: 4, kind: input, shape index: {}]   ;;  %s4273_s5 = inlined_call_operand.vmem [shape: f32[1,256], index: 5, kind: input, shape index: {}]   ;;  %s4274_s6 = inlined_call_operand.vmem [shape: f32[1,256], index: 6, kind: input, shape index: {}]   ;;  %s4275_s7 = inlined_call_operand.vmem [shape: bf16[256,128], index: 7, kind: input, shape index: {}]   ;;  %s4276_s8 = inlined_call_operand.vmem [shape: f32[1,128], index: 8, kind: input, shape index: {}]   ;;  %s4277_s9 = inlined_call_operand.hbm [shape: f32[1,128], index: 9, kind: input, shape index: {}]   ;;  %s4278_s10 = inlined_call_operand.vmem [shape: f32[1,128], index: 10, kind: input, shape index: {}]   ;;  %s4279_s11 = inlined_call_operand.hbm [shape: bf16[128,384], index: 11, kind: input, shape index: {}]   ;;  %s4280_s12 = inlined_call_operand.vmem [shape: f32[1,384], index: 12, kind: input, shape index: {}]   ;;  %s4281_s13 = inlined_call_operand.hbm [shape: bf16[128,128], index: 13, kind: input, shape index: {}]   ;;  %s4282_s14 = inlined_call_operand.vmem [shape: f32[1,128], index: 14, kind: input, shape index: {}]   ;;  %s4283_s15 = inlined_call_operand.hbm [shape: bf16[128,128], index: 15, kind: input, shape index: {}]   ;;  %s4284_s16 = inlined_call_operand.vmem [shape: f32[1,128], index: 16, kind: input, shape index: {}]   ;;  %s4285_s17 = inlined_call_operand.vmem [shape: f32[1,128], index: 17, kind: input, shape index: {}]   ;;  %s4286_s18 = inlined_call_operand.vmem [shape: f32[1,128], index: 18, kind: input, shape index: {}]   ;;  %s4287_s19 = inlined_call_operand.hbm [shape: bf16[128,128], index: 19, kind: input, shape index: {}]   ;;  %s4288_s20 = inlined_call_operand.vmem [shape: f32[1,128], index: 20, kind: input, shape index: {}]   ;;  %s4289_s21 = inlined_call_operand.vmem [shape: f32[8,128], index: 21, kind: output, shape index: {}]  }
   0x1   :  { %4294 = sst [smem:[#allocation18_spill]] %s4268_s0 }
   0x2   :  { %4295 = sst [smem:[#allocation19_spill]] %s4269_s1 }
   0x3   :  { %4296 = sst [smem:[#allocation20_spill]] %s4270_s2 }
   0x4   :  { %4297 = sst [smem:[#allocation21_spill]] %s4271_s3 }
   0x5   :  { %4298 = sst [smem:[#allocation22_spill]] %s4272_s4 }
   0x6   :  { %4299 = sst [smem:[#allocation23_spill]] %s4273_s5 }
   0x7   :  { %4300 = sst [smem:[#allocation24_spill]] %s4278_s10 }
   0x8   :  { %4301 = sst [smem:[#allocation25_spill]] %s4282_s14 }
   0x9   :  { %4302 = sst [smem:[#allocation26_spill]] %s4284_s16 }
   0xa   :  { %4303 = sst [smem:[#allocation27_spill]] %s4285_s17 }
   0xb   :  { %4304 = sst [smem:[#allocation28_spill]] %s4286_s18 }
   0xc   :  { %4305 = sst [smem:[#allocation29_spill]] %s4288_s20 }
   0xd   :  { %4306 = sst [smem:[#allocation30_spill]] %s4289_s21 }
   0xe   :  { %26 = vsyncpa [#allocation5], 0 }
   0xf   :  { %27 = vsyncpa [#allocation7], 0 }
  0x10   :  { %28 = vsyncpa [#allocation11], 0  ;;  %s3686_s2 = smov 0   ;;  %s3688_s25 = smov 0  }
  0x11   :  { %s3690_s26 = smov 0   ;;  %s3692_s27 = smov 0  }
  0x12 LB: > { %s3705_s3 = sadd.s32 4294967295, %s3549_s27   ;;  %p285_p0 = scmp.ne.s32.totalorder %s3541_s25, %s3537_s2  ;;  %s3549_s27 = sphi %s3692_s27, %s4339_s27   ;;  %s3545_s26 = sphi %s3690_s26, %s4338_s26   ;;  %s3541_s25 = sphi %s3688_s25, %s4337_s25   ;;  %s3537_s2 = sphi %s3686_s2, %s4336_s2  }
  0x13   : > { %p4291_p1 = scmp.eq.s32.totalorder %s3705_s3, 0  ;;  %p2751_p2 = scmp.ge.s32.totalorder %s3549_s27, 1 }
  0x14   : > { %p511_p3 = scmp.lt.s32.totalorder %s3549_s27, 4  ;;  %s3551_s0 = smov [#allocation4]  }
  0x15   : > { %p3714_p5 = por %p4291_p1, %p285_p0  ;;  %s532_s4 = sshll.u32 %s3551_s0, 4  ;;  %s533_s4 = int_to_ptr.vmem [resolvable:$true] %s532_s4 }
  0x16   : > { %p3718_p6 = pnand %p2751_p2, %p511_p3  ;;  %s3552_s5 = smov [#allocation6]  }
  0x17   : > { %s4307_s28 = scalar_select %p3714_p5, 1, 0 }
  0x18   : > { %s4308_s29 = scalar_select %p3718_p6, 1, 0 }
  0x19   : > { %p3137_p7 = pneg %p3718_p6  ;;  %s561_s22 = sshll.u32 %s3552_s5, 4  ;;  %s3730_s22 = int_to_ptr.vmem [resolvable:$true] %s561_s22 }
  0x1a   : > { %s4310_s24 = sld [smem:[#allocation21_spill]] }
  0x1b   : > { %p3726_p8 = pnand %p3137_p7, %p4291_p1 }
  0x1d   : > { %p3740_p10 = pneg %p3726_p8 }
  0x20   : > { %s3329_s2 = scalar_lea.hbm %s4310_s24, 256 }
  0x21   : > { %p3330_p9 = scmp.ne.s32.totalorder %s4310_s24, %s3329_s2  ;;  %p3336_p13 = scmp.lt.u32.totalorder %s3329_s2, %s4310_s24 }
  0x23   : > { %p3332_p11 = pnand %p3740_p10, %p3330_p9 }
  0x25   : > { %p3333_p12 = pneg %p3332_p11 }
  0x27   : > { %p3338_p0 = pnand %p3336_p13, %p3333_p12 }
  0x29   : > { %3341 = shalt.err (!%p3338_p0)
}
  0x2a   : > { %s3342_s23 = scalar_lea.vmem %s533_s4, 256  ;;  %p3350_p4 = scmp.lt.s32.totalorder %s533_s4, %s533_s4 }
  0x2b   : > { %p3343_p2 = scmp.ne.s32.totalorder %s533_s4, %s3342_s23  ;;  %p3351_p1 = scmp.lt.s32.totalorder %s3342_s23, %s3342_s23 }
  0x2d   : > { %p3345_p3 = pnand %p3343_p2, %p3740_p10  ;;  %p3352_p5 = por %p3351_p1, %p3350_p4 }
  0x2f   : > { %p3346_p7 = pneg %p3345_p3 }
  0x31   : > { %p3353_p6 = pnand %p3352_p5, %p3346_p7 }
  0x33   : > { %3356 = shalt.err (!%p3353_p6)
}
  0x34   : > { %s3553_s20 = smov 128   ;;  %s3554_s21 = smov 8  }
  0x35   : > { %3140 = dma.hbm_to_vmem [thread:$0]  (!%p3726_p8), %s4310_s24, 256, %s533_s4, [#allocation5], %s3553_s20, %s3553_s20, %s3554_s21  }
  0x36   : > { %s3357_s17 = scalar_lea.hbm %s4277_s9, 16 }
  0x37   : > { %p3358_p9 = scmp.ne.s32.totalorder %s4277_s9, %s3357_s17  ;;  %p3364_p5 = scmp.lt.u32.totalorder %s3357_s17, %s4277_s9 }
  0x39   : > { %p3360_p1 = pnand %p3358_p9, %p3740_p10 }
  0x3b   : > { %p3361_p4 = pneg %p3360_p1 }
  0x3d   : > { %p3366_p6 = pnand %p3364_p5, %p3361_p4 }
  0x3f   : > { %3369 = shalt.err (!%p3366_p6)
}
  0x40   : > { %s3370_s4 = scalar_lea.vmem %s3730_s22, 16  ;;  %s3377_s14 = scalar_lea.vmem %s3730_s22, 32 }
  0x41   : > { %p3371_p11 = scmp.ne.s32.totalorder %s3730_s22, %s3370_s4  ;;  %p3378_p0 = scmp.lt.s32.totalorder %s3730_s22, %s3730_s22 }
  0x42   : > { %p3379_p2 = scmp.lt.s32.totalorder %s3377_s14, %s3370_s4 }
  0x43   : > { %p3373_p12 = pnand %p3371_p11, %p3740_p10 }
  0x44   : > { %p3380_p3 = por %p3379_p2, %p3378_p0 }
  0x45   : > { %p3374_p13 = pneg %p3373_p12 }
  0x47   : > { %p3381_p7 = pnand %p3380_p3, %p3374_p13 }
  0x49   : > { %3384 = shalt.err (!%p3381_p7)
}
  0x4a   : > { %3143 = dma.hbm_to_vmem [thread:$0]  (!%p3726_p8), %s4277_s9, 16, %s3730_s22, [#allocation7]  }
  0x4b   : > { %s3555_s17 = smov [#allocation10]   ;;  %s3556_s21 = smov [#allocation9]  }
  0x4c   : > { %s590_s20 = sshll.u32 %s3555_s17, 4  ;;  %s574_s18 = sshll.u32 %s3556_s21, 4  ;;  %s591_s20 = int_to_ptr.vmem [resolvable:$true] %s590_s20  ;;  %s3780_s18 = int_to_ptr.vmem [resolvable:$true] %s574_s18 }
  0x4d   : > { %s3385_s5 = scalar_lea.hbm %s4283_s15, 1024 }
  0x4e   : > { %p3386_p9 = scmp.ne.s32.totalorder %s4283_s15, %s3385_s5  ;;  %p3392_p5 = scmp.lt.u32.totalorder %s3385_s5, %s4283_s15 }
  0x50   : > { %p3388_p1 = pnand %p3386_p9, %p3740_p10 }
  0x52   : > { %p3389_p4 = pneg %p3388_p1 }
  0x54   : > { %p3394_p6 = pnand %p3392_p5, %p3389_p4 }
  0x56   : > { %3397 = shalt.err (!%p3394_p6)
}
  0x57   : > { %s3398_s10 = scalar_lea.vmem %s591_s20, 1024  ;;  %p3406_p0 = scmp.lt.s32.totalorder %s591_s20, %s591_s20 }
  0x58   : > { %p3399_p11 = scmp.ne.s32.totalorder %s591_s20, %s3398_s10  ;;  %p3407_p2 = scmp.lt.s32.totalorder %s3398_s10, %s3398_s10 }
  0x5a   : > { %p3401_p12 = pnand %p3399_p11, %p3740_p10  ;;  %p3408_p3 = por %p3407_p2, %p3406_p0 }
  0x5c   : > { %p3402_p13 = pneg %p3401_p12 }
  0x5e   : > { %p3409_p7 = pnand %p3408_p3, %p3402_p13 }
  0x60   : > { %3412 = shalt.err (!%p3409_p7)
}
  0x61   : > { %s3557_s16 = smov 64   ;;  %s3558_s17 = smov 4  }
  0x62   : > { %3149 = dma.hbm_to_vmem [thread:$0]  (!%p3726_p8), %s4283_s15, 1024, %s591_s20, [#allocation11], %s3557_s16, %s3557_s16, %s3558_s17  }
  0x63   : > { %s3413_s23 = scalar_lea.hbm %s4281_s13, 1024 }
  0x64   : > { %p3414_p9 = scmp.ne.s32.totalorder %s4281_s13, %s3413_s23  ;;  %p3420_p5 = scmp.lt.u32.totalorder %s3413_s23, %s4281_s13 }
  0x66   : > { %p3416_p1 = pnand %p3414_p9, %p3740_p10 }
  0x68   : > { %p3417_p4 = pneg %p3416_p1 }
  0x6a   : > { %p3422_p6 = pnand %p3420_p5, %p3417_p4 }
  0x6c   : > { %3425 = shalt.err (!%p3422_p6)
}
  0x6d   : > { %s3426_s20 = scalar_lea.vmem %s3780_s18, 1024  ;;  %p3434_p0 = scmp.lt.s32.totalorder %s3780_s18, %s3780_s18 }
  0x6e   : > { %p3427_p11 = scmp.ne.s32.totalorder %s3780_s18, %s3426_s20  ;;  %p3435_p2 = scmp.lt.s32.totalorder %s3426_s20, %s3426_s20 }
  0x70   : > { %p3429_p12 = pnand %p3427_p11, %p3740_p10  ;;  %p3436_p3 = por %p3435_p2, %p3434_p0 }
  0x72   : > { %p3430_p13 = pneg %p3429_p12 }
  0x74   : > { %p3437_p7 = pnand %p3436_p3, %p3430_p13 }
  0x76   : > { %3440 = shalt.err (!%p3437_p7)
}
  0x77   : > { %3146 = dma.hbm_to_vmem [thread:$0]  (!%p3726_p8), %s4281_s13, 1024, %s3780_s18, [#allocation7], %s3557_s16, %s3557_s16, %s3558_s17  }
  0x78   : > { %s3559_s2 = smov [#allocation12]   ;;  %s3830_s23 = sadd.s32 1, %s3549_s27  }
  0x79   : > { %s612_s5 = sshll.u32 %s3559_s2, 4  ;;  %s3441_s22 = scalar_lea.hbm %s4287_s19, 1024  ;;  %s613_s5 = int_to_ptr.vmem [resolvable:$true] %s612_s5 }
  0x7a   : > { %p3442_p9 = scmp.ne.s32.totalorder %s4287_s19, %s3441_s22  ;;  %p3448_p5 = scmp.lt.u32.totalorder %s3441_s22, %s4287_s19 }
  0x7c   : > { %p3444_p1 = pnand %p3442_p9, %p3740_p10 }
  0x7e   : > { %p3445_p4 = pneg %p3444_p1 }
  0x80   : > { %p3450_p6 = pnand %p3448_p5, %p3445_p4 }
  0x82   : > { %3453 = shalt.err (!%p3450_p6)
}
  0x83   : > { %s3454_s18 = scalar_lea.vmem %s613_s5, 1024  ;;  %p3462_p0 = scmp.lt.s32.totalorder %s613_s5, %s613_s5 }
  0x84   : > { %p3455_p11 = scmp.ne.s32.totalorder %s613_s5, %s3454_s18  ;;  %p3463_p2 = scmp.lt.s32.totalorder %s3454_s18, %s3454_s18 }
  0x86   : > { %p3457_p12 = pnand %p3455_p11, %p3740_p10  ;;  %p3464_p3 = por %p3463_p2, %p3462_p0 }
  0x88   : > { %p3458_p13 = pneg %p3457_p12 }
  0x8a   : > { %p3465_p7 = pnand %p3464_p3, %p3458_p13 }
  0x8c   : > { %3468 = shalt.err (!%p3465_p7)
}
  0x8d   : > { %3152 = dma.hbm_to_vmem [thread:$0]  (!%p3726_p8), %s4287_s19, 1024, %s613_s5, [#allocation11], %s3557_s16, %s3557_s16, %s3558_s17  }
  0x8e   : > { %s269_s0 = ssub.s32 %s3549_s27, %s3830_s23  ;;  %s272_s30 = sadd.s32 1, %s3545_s26 }
  0x8f   : > { %p270_p10 = scmp.eq.s32.totalorder %s269_s0, 0  ;;  %p279_p9 = scmp.ne.s32.totalorder %s3545_s26, %s3541_s25 }
  0x90   : > { %p280_p1 = scmp.eq.s32.totalorder %s3549_s27, 0  ;;  %p3162_p4 = scmp.lt.s32.totalorder %s3549_s27, 3 }
  0x91   : > { %s3861_s14 = scalar_select %p270_p10, %s3545_s26, %s272_s30  }
  0x92   : > { %p281_p5 = por %p280_p1, %p279_p9  ;;  %s629_s22 = sand.u32 1, %s3549_s27  }
  0x93   : > { %s631_s10 = sand.u32 1, %s3545_s26   ;;  %s2759_s21 = sshll.u32 %s3549_s27, 6 }
  0x94   : > { %s2758_s20 = sshll.u32 %s631_s10, 6  ;;  %s3869_s2 = scalar_lea.hbm %s4279_s11, %s2759_s21 }
  0x95   : > { %s633_s5 = scalar_lea.vmem [#allocation8], %s2758_s20  ;;  %p3871_p8 = pnand %p3162_p4, %p281_p5 }
  0x96   : > { %s639_s4 = sshll.u32 %s633_s5, 4  ;;  %s3877_s27 = scalar_lea.sflag [#allocation5], %s629_s22  ;;  %s3875_s4 = int_to_ptr.vmem [resolvable:$true] %s639_s4 }
  0x97   : > { %s3469_s30 = scalar_lea.hbm %s3869_s2, 1024  ;;  %p3471_p11 = pneg %p3871_p8 }
  0x98   : > { %p3470_p6 = scmp.ne.s32.totalorder %s3869_s2, %s3469_s30  ;;  %s3474_s21 = scalar_lea.hbm %s4279_s11, 3072 }
  0x99   : > { %p3475_p0 = scmp.lt.u32.totalorder %s3869_s2, %s4279_s11  ;;  %p3476_p2 = scmp.lt.u32.totalorder %s3474_s21, %s3469_s30 }
  0x9a   : > { %p3472_p12 = pnand %p3471_p11, %p3470_p6  ;;  %p3478_p7 = scmp.lt.u32.totalorder %s3469_s30, %s3869_s2 }
  0x9b   : > { %p3477_p3 = por %p3476_p2, %p3475_p0 }
  0x9c   : > { %p3473_p13 = pneg %p3472_p12 }
  0x9d   : > { %p3479_p10 = por %p3478_p7, %p3477_p3 }
  0x9f   : > { %p3480_p9 = pnand %p3479_p10, %p3473_p13 }
  0xa1   : > { %3483 = shalt.err (!%p3480_p9)
}
  0xa2   : > { %s3484_s22 = scalar_lea.vmem %s3875_s4, 1024  ;;  %s3560_s5 = smov [#allocation8]  }
  0xa3   : > { %p3485_p1 = scmp.ne.s32.totalorder %s3875_s4, %s3484_s22  ;;  %s3489_s10 = sshll.u32 %s3560_s5, 4  ;;  %s3490_s10 = int_to_ptr.vmem [resolvable:$false] %s3489_s10 }
  0xa4   : > { %s3491_s20 = scalar_lea.vmem %s3490_s10, 2048  ;;  %p3492_p6 = scmp.lt.s32.totalorder %s3875_s4, %s3490_s10 }
  0xa5   : > { %p3487_p4 = pnand %p3485_p1, %p3471_p11  ;;  %p3493_p12 = scmp.lt.s32.totalorder %s3491_s20, %s3484_s22 }
  0xa7   : > { %p3488_p5 = pneg %p3487_p4  ;;  %p3494_p0 = por %p3493_p12, %p3492_p6 }
  0xa9   : > { %p3495_p2 = pnand %p3494_p0, %p3488_p5 }
  0xab   : > { %3498 = shalt.err (!%p3495_p2)
}
  0xac   : > { %s3561_s30 = smov 192   ;;  %p4313_p11 = scmp.ne.s32.totalorder %s4308_s29, 0 }
  0xad   : > { %3156 = dma.hbm_to_vmem [thread:$0]  (!%p3871_p8), %s3869_s2, 1024, %s3875_s4, %s3877_s27, %s3561_s30, %s3557_s16, %s3558_s17  }
  0xae   : > { %657 = sbr.rel (%p4313_p11) target bundleno = 3694 (0xe6e), region = 104  ;;  %p4314_p13 = scmp.eq.s32.totalorder (!%p4313_p11), %s3705_s3, 0 }
  0xb5   : > { %3516 = dma.done.wait (%p4314_p13), [#allocation5], 256   ;;  %p4315_p3 = pmov %p4314_p13 }
  0xb7   : > { %3518 = vsyncadd (%p4315_p3), [#allocation5], 4294967040  ;;  %p4316_p7 = pmov %p4315_p3 }
  0xb8   : > { %p4317_p10 = pmov %p4315_p3 }
  0xb9   : > { %3520 = dma.done.wait (%p4316_p7), [#allocation7], 16  }
  0xba   : > { %3522 = vsyncadd (%p4317_p10), [#allocation7], 4294967280  ;;  %s667_s0 = sand.u32 1, %s3705_s3   ;;  %s669_s16 = sand.u32 1, %s3541_s25  }
  0xbb   : > { %s2763_s17 = sshll.u32 %s669_s16, 6  ;;  %s668_s29 = scalar_lea.sflag [#allocation5], %s667_s0 }
  0xbc   : > { %s3919_s2 = scalar_lea.vmem [#allocation8], %s2763_s17  ;;  %p4318_p8 = scmp.ne.s32.totalorder %s4307_s28, 0 }
  0xbe   : > { %3524 = dma.done.wait (%p4318_p8), %s668_s29, 1024  }
  0xbf   : > { %3526 = vsyncadd (%p4318_p8), %s668_s29, 4294966272  ;;  %p4319_p9 = pmov %p4315_p3 }
  0xc0   : > { %p4320_p1 = pmov %p4315_p3 }
  0xc1   : > { %3528 = dma.done.wait (%p4319_p9), [#allocation7], 1024  }
  0xc2   : > { %3530 = vsyncadd (%p4320_p1), [#allocation7], 4294966272  ;;  %p4321_p4 = pmov %p4320_p1 }
  0xc3   : > { %p4322_p5 = pmov %p4320_p1 }
  0xc4   : > { %3532 = dma.done.wait (%p4321_p4), [#allocation11], 2048  }
  0xc5   : > { %3534 = vsyncadd (%p4322_p5), [#allocation11], 4294965248  ;;  %v3562_v0 = vmov 0.0   ;;  %vm3563_vm0 = vmmov 0   ;;  %v3224_v1 = vld [vmem:[%s3919_s2] sm:$0xff]   ;;  %v3225_v2 = vld [vmem:[%s3919_s2 + $0x8] sm:$0xff]  }
  0xc6   : > { %2939 = vmatprep.subr.bf16.mxu0 %v3562_v0  ;;  %2955 = vmatprep.mubr.msk.bf16.mxu0 %vm3563_vm0, %v3562_v0  ;;  %v3226_v3 = vld [vmem:[%s3919_s2 + $0x10] sm:$0xff]   ;;  %v3227_v4 = vld [vmem:[%s3919_s2 + $0x18] sm:$0xff]   ;;  %v3228_v5 = vld [vmem:[%s3919_s2 + $0x20] sm:$0xff]   ;;  %s4323_s27 = sld [smem:[#allocation19_spill]]  ;;  %p740_p6 = scmp.lt.s32.totalorder %s3705_s3, 2 }
  0xc7   : > { %2940 = vmatpush3.bf16.msra.mxu0 %v3224_v1  ;;  %v3229_v6 = vld [vmem:[%s3919_s2 + $0x28] sm:$0xff]   ;;  %v3230_v7 = vld [vmem:[%s3919_s2 + $0x30] sm:$0xff]   ;;  %v3231_v8 = vld [vmem:[%s3919_s2 + $0x38] sm:$0xff]   ;;  %s2776_s5 = sshll.u32 %s3705_s3, 3  ;;  %p4324_p12 = scmp.ne.s32.totalorder %s3705_s3, 0 }
  0xc8   : > { %2941 = vmatprep.subr.bf16.mxu0 %v3562_v0  ;;  %s741_s21 = scalar_select %p740_p6, %s3705_s3, 2 }
  0xc9   : > { %s857_s10 = scalar_lea.vmem [#allocation2], %s2776_s5  ;;  %v3232_v16 = vld [vmem:[#allocation4 + $0x4] ss:$8 sps:$4 sm:$0xff] (!%p4324_p12)   ;;  %v3234_v17 = vld [vmem:[#allocation4] ss:$8 sps:$4 sm:$0xff] (!%p4324_p12)   ;;  %v3564_v18 = vmov (!%p4324_p12), 0   ;;  %v868_v20 = vlaneseq (!%p4324_p12) }
  0xca   : > { %s742_s22 = scalar_lea.vmem %s4280_s12, %s741_s21  ;;  %vm888_vm1 = vcmask (!%p4324_p12), 130048   ;;  %s4325_s0 = sld [smem:[#allocation18_spill]] (!%p4324_p12)  ;;  %v3235_v37 = vld [vmem:[%s4275_s7 + $0x40] sm:$0xff] (!%p4324_p12)   ;;  %v3237_v39 = vld [vmem:[%s4275_s7 + $0x48] sm:$0xff] (!%p4324_p12)   ;;  %v3239_v41 = vld [vmem:[%s4275_s7 + $0x50] sm:$0xff] (!%p4324_p12)  }
  0xcb   : > { %2942 = vmatpush3.bf16.msra.mxu0 %v3225_v2  ;;  %v2767_v10 = vld [vmem:[%s742_s22] ss:$0 sm:$0xff]  ;;  %v869_v21 = vshrl.u32 (!%p4324_p12), %v868_v20, 7  ;;  %s4326_s29 = sld [smem:[#allocation22_spill]] (!%p4324_p12)  ;;  %2858 = vmatprep.subr.bf16.mxu1 (!%p4324_p12), %v3235_v37  ;;  %v3238_v40 = vld [vmem:[%s4275_s7 + $0x8] sm:$0xff] (!%p4324_p12)   ;;  %v3240_v42 = vld [vmem:[%s4275_s7 + $0x10] sm:$0xff] (!%p4324_p12)  }
  0xcc   : > { %2943 = vmatprep.subr.bf16.mxu0 %v3562_v0  ;;  %v744_v9 = vld [vmem:[%s4323_s27] sm:$0xf]  ;;  %v3241_v43 = vld [vmem:[%s4275_s7 + $0x58] sm:$0xff] (!%p4324_p12)   ;;  %v3245_v47 = vld [vmem:[%s4275_s7 + $0x68] sm:$0xff] (!%p4324_p12)   ;;  %s4327_s4 = sld [smem:[#allocation23_spill]] (!%p4324_p12) }
  0xcd   : > { %v3955_v22 = vsub.s32 (!%p4324_p12), 0, %v869_v21  ;;  %v3960_v24 = vsub.s32 (!%p4324_p12), 1, %v869_v21  ;;  %v3236_v38 = vld [vmem:[%s4275_s7] sm:$0xff] (!%p4324_p12)   ;;  %v3242_v44 = vld [vmem:[%s4275_s7 + $0x18] sm:$0xff] (!%p4324_p12)   ;;  %v3246_v48 = vld [vmem:[%s4275_s7 + $0x28] sm:$0xff] (!%p4324_p12)  }
  0xce   : > { %2859 = vmatpush3.bf16.msra.mxu1 (!%p4324_p12), %v3236_v38  ;;  %v3243_v45 = vld [vmem:[%s4275_s7 + $0x60] sm:$0xff] (!%p4324_p12)   ;;  %v3247_v49 = vld [vmem:[%s4275_s7 + $0x70] sm:$0xff] (!%p4324_p12)   ;;  %v3249_v51 = vld [vmem:[%s4275_s7 + $0x78] sm:$0xff] (!%p4324_p12)  }
  0xcf   : > { %2944 = vmatpush3.bf16.msra.mxu0 %v3226_v3  ;;  %2860 = vmatprep.subr.bf16.mxu1 (!%p4324_p12), %v3237_v39  ;;  %v3244_v46 = vld [vmem:[%s4275_s7 + $0x20] sm:$0xff] (!%p4324_p12)   ;;  %v3248_v50 = vld [vmem:[%s4275_s7 + $0x30] sm:$0xff] (!%p4324_p12)   ;;  %v3250_v52 = vld [vmem:[%s4275_s7 + $0x38] sm:$0xff] (!%p4324_p12)  }
  0xd0   : > { %2945 = vmatprep.subr.bf16.mxu0 %v3562_v0  ;;  %v863_v19 = vld [vmem:[%s4325_s0] sm:$0xf] (!%p4324_p12) }
  0xd1   : > { %v866_v23 = vld [vmem:[%s4326_s29] sm:$0x3] (!%p4324_p12) }
  0xd2   : > { %v871_v25 = vrot.slane (!%p4324_p12), %v866_v23, %v3955_v22  ;;  %v875_v26 = vrot.slane (!%p4324_p12), %v866_v23, %v3960_v24  ;;  %2861 = vmatpush3.bf16.msra.mxu1 (!%p4324_p12), %v3238_v40  ;;  %v933_v60 = vld [vmem:[%s4327_s4] sm:$0x3] (!%p4324_p12) }
  0xd3   : > { %2946 = vmatpush3.bf16.msra.mxu0 %v3227_v4  ;;  %2862 = vmatprep.subr.bf16.mxu1 (!%p4324_p12), %v3239_v41  ;;  %v934_v61 = vld [vmem:[%s4274_s6] sm:$0x3] (!%p4324_p12)  ;;  %v962_v1 = vrot.slane (!%p4324_p12), %v933_v60, %v3960_v24 }
  0xd4   : > { %2947 = vmatprep.subr.bf16.mxu0 %v3562_v0  ;;  %v971_v4 = vrot.slane (!%p4324_p12), %v934_v61, %v3955_v22 }
  0xd6   : > { %2863 = vmatpush3.bf16.msra.mxu1 (!%p4324_p12), %v3240_v42 }
  0xd7   : > { %2948 = vmatpush3.bf16.msra.mxu0 %v3228_v5  ;;  %2864 = vmatprep.subr.bf16.mxu1 (!%p4324_p12), %v3241_v43  ;;  %v975_v5 = vrot.slane (!%p4324_p12), %v934_v61, %v3960_v24 }
  0xd8   : > { %2949 = vmatprep.subr.bf16.mxu0 %v3562_v0 }
  0xda   : > { %2865 = vmatpush3.bf16.msra.mxu1 (!%p4324_p12), %v3242_v44 }
  0xdb   : > { %2950 = vmatpush3.bf16.msra.mxu0 %v3229_v6  ;;  %2866 = vmatprep.subr.bf16.mxu1 (!%p4324_p12), %v3243_v45 }
  0xdc   : > { %2951 = vmatprep.subr.bf16.mxu0 %v3562_v0 }
  0xde   : > { %2867 = vmatpush3.bf16.msra.mxu1 (!%p4324_p12), %v3244_v46 }
  0xdf   : > { %2952 = vmatpush3.bf16.msra.mxu0 %v3230_v7  ;;  %2868 = vmatprep.subr.bf16.mxu1 (!%p4324_p12), %v3245_v47 }
  0xe0   : > { %2953 = vmatprep.subr.bf16.mxu0 %v3562_v0  ;;  %v958_v0 = vrot.slane (!%p4324_p12), %v933_v60, %v3955_v22 }
  0xe2   : > { %2869 = vmatpush3.bf16.msra.mxu1 (!%p4324_p12), %v3246_v48 }
  0xe3   : > { %2954 = vmatpush3.bf16.msra.mxu0 %v3231_v8  ;;  %2870 = vmatprep.subr.bf16.mxu1 (!%p4324_p12), %v3247_v49 }
  0xe4   : > { %892 = vmatprep.subr.bf16.mxu0 (!%p4324_p12), %v3232_v16 }
  0xe6   : > { %2956 = vmatmul.mubr.bf16.vlgmr.msra.gmra.mrb[0].mxu0 %v744_v9  ;;  %2871 = vmatpush3.bf16.msra.mxu1 (!%p4324_p12), %v3248_v50 }
  0xe7   : > { %924 = vmatprep.mubr.bf16.mxu0 (!%p4324_p12), %v3564_v18  ;;  %893 = vmatpush1.bf16.msra.mxu0 (!%p4324_p12), %v3234_v17 }
  0xe8   : > { %2872 = vmatprep.subr.bf16.mxu1 (!%p4324_p12), %v3249_v51 }
  0xea   : > { %2873 = vmatpush3.bf16.msra.mxu1 (!%p4324_p12), %v3250_v52 }
 0x1b6   : > { %862 = sbr.rel (%p4324_p12) target bundleno = 1326 (0x52e), region = 132 }
 0x1b9   : > { %v850_v11 = vpop.f32.mrb[0].mxu0 }
 0x1ba   : > { %v851_v12 = vadd.f32 %v2767_v10, %v850_v11  ;;  %v2957_v13 = vpop.f32.mrb[1].mxu0 }
 0x1bb   : > { %v853_v14 = vpop.f32.mrb[2].mxu0 }
 0x1bc   : > { %858 = vst [vmem:[%s857_s10] sm:$0xff] %v851_v12  ;;  %v2958_v15 = vpop.f32.mrb[3].mxu0  ;;  %2780 = vmatmul.mubr.msk.bf16.vlgmr.msra.gmra.mrb[0].mxu0 (!%p4324_p12), %vm888_vm1, %v863_v19  ;;  %s4328_s10 = sld [smem:[#allocation24_spill]] (!%p4324_p12) }
 0x28f   : > { %v926_v27 = vpop.f32.mrb[0].mxu0 }
 0x290   : > { %v927_v28 = vadd.f32 %v926_v27, %v871_v25  ;;  %v928_v29 = vpop.f32.mrb[1].mxu0 }
 0x291   : > { %v929_v30 = vadd.f32 %v928_v29, %v875_v26  ;;  %v930_v31 = vpop.f32.mrb[2].mxu0 }
 0x292   : > { %v931_v32 = vpop.f32.mrb[3].mxu0  ;;  %v940_v34 = vmul.f32 %v927_v28, %v927_v28 }
 0x293   : > { %v935_v33 = vadd.f32 %v929_v30, %v927_v28  ;;  %v941_v35 = vmul.f32 %v929_v30, %v929_v30 }
 0x295   : > { %936 = vadd.xlane.f32.xlu0 %v935_v33  ;;  %v942_v36 = vadd.f32 %v941_v35, %v940_v34 }
 0x299   : > { %943 = vadd.xlane.f32.xlu0 %v942_v36 }
 0x322   : > { %v937_v53 = vpop.xlane.xlu0 %936 }
 0x323   : > { %v939_v54 = vmul.f32 0.00390625, %v937_v53 }
 0x325   : > { %v946_v56 = vmul.f32 %v939_v54, %v939_v54  ;;  %v948_v62 = vsub.f32 %v927_v28, %v939_v54  ;;  %v949_v63 = vsub.f32 %v929_v30, %v939_v54 }
 0x326   : > { %v944_v55 = vpop.xlane.xlu0 %943 }
 0x327   : > { %v945_v57 = vmul.f32 0.00390625, %v944_v55 }
 0x329   : > { %v947_v58 = vsub.f32 %v945_v57, %v946_v56  ;;  %v3565_v56 = vmov 1.0  }
 0x32b   : > { %v950_v59 = vadd.f32 1e-05, %v947_v58 }
 0x32d   : > { %3251 = vrsqrt.f32 %v950_v59 }
 0x337   : > { %v3252_v2 = vpop.eup %3251 }
 0x338   : > { %v953_v3 = vmul.f32 %v3252_v2, %v949_v63  ;;  %v952_v6 = vmul.f32 %v3252_v2, %v948_v62 }
 0x33a   : > { %v966_v7 = vmul.f32 %v962_v1, %v953_v3  ;;  %v965_v8 = vmul.f32 %v958_v0, %v952_v6 }
 0x33c   : > { %v979_v9 = vadd.f32 %v975_v5, %v966_v7  ;;  %v978_v10 = vadd.f32 %v971_v4, %v965_v8  ;;  %v2781_v7 = vld [vmem:[%s4276_s8] ss:$0 sm:$0xff] }
 0x33e   : > { %v983_v11 = vmul.f32 0.70710677, %v979_v9  ;;  %v982_v12 = vmul.f32 0.70710677, %v978_v10  ;;  %v981_v62 = vmul.f32 0.5, %v979_v9  ;;  %v980_v0 = vmul.f32 0.5, %v978_v10 }
 0x340   : > { %v989_v13 = vand.u32 2147483647, %v983_v11  ;;  %v988_v14 = vand.u32 2147483647, %v982_v12  ;;  %vm985_vm2 = vcmp.lt.f32.partialorder %v983_v11, 0.0  ;;  %vm984_vm3 = vcmp.lt.f32.partialorder %v982_v12, 0.0 }
 0x341   : > { %v987_v57 = vsel %vm985_vm2, -1.0, %v3565_v56  ;;  %v986_v60 = vsel %vm984_vm3, -1.0, %v3565_v56 }
 0x342   : > { %v991_v15 = vmul.f32 0.3275911, %v989_v13  ;;  %v990_v16 = vmul.f32 0.3275911, %v988_v14  ;;  %v1021_v22 = vsub.f32 0.0, %v989_v13  ;;  %v1020_v25 = vsub.f32 0.0, %v988_v14 }
 0x344   : > { %v993_v17 = vadd.f32 1.0, %v991_v15  ;;  %v992_v18 = vadd.f32 1.0, %v990_v16  ;;  %v1023_v28 = vmul.f32 %v1021_v22, %v989_v13  ;;  %v1022_v31 = vmul.f32 %v1020_v25, %v988_v14  ;;  %v2799_v25 = vld [vmem:[%s4328_s10] ss:$0 sm:$0xff] }
 0x346   : > { %3253 = vrcp.f32 %v993_v17  ;;  %v1026_v34 = vmul.f32 1.442695, %v1023_v28  ;;  %v1024_v37 = vmul.f32 1.442695, %v1022_v31 }
 0x347   : > { %3255 = vrcp.f32 %v992_v18 }
 0x348   : > { %3257 = vpow2.f32 %v1026_v34 }
 0x349   : > { %3259 = vpow2.f32 %v1024_v37 }
 0x350   : > { %v3254_v19 = vpop.eup %3253 }
 0x351   : > { %v3256_v20 = vpop.eup %3255  ;;  %v997_v21 = vmul.f32 %v3254_v19, %v993_v17 }
 0x352   : > { %v996_v23 = vmul.f32 %v3256_v20, %v992_v18  ;;  %v3258_v50 = vpop.eup %3257 }
 0x353   : > { %v999_v24 = vsub.f32 2.0, %v997_v21  ;;  %v3260_v52 = vpop.eup %3259 }
 0x354   : > { %v998_v26 = vsub.f32 2.0, %v996_v23  ;;  %v2798_v23 = vld [vmem:[#allocation6] ss:$0 sm:$0xff] }
 0x355   : > { %v1001_v27 = vmul.f32 %v3254_v19, %v999_v24 }
 0x356   : > { %v1000_v29 = vmul.f32 %v3256_v20, %v998_v26 }
 0x357   : > { %v1003_v30 = vmul.f32 1.0614054, %v1001_v27 }
 0x358   : > { %v1002_v32 = vmul.f32 1.0614054, %v1000_v29 }
 0x359   : > { %v1005_v33 = vadd.f32 -1.4531521, %v1003_v30 }
 0x35a   : > { %v1004_v35 = vadd.f32 -1.4531521, %v1002_v32 }
 0x35b   : > { %v1007_v36 = vmul.f32 %v1005_v33, %v1001_v27 }
 0x35c   : > { %v1006_v38 = vmul.f32 %v1004_v35, %v1000_v29 }
 0x35d   : > { %v1009_v39 = vadd.f32 1.4214138, %v1007_v36 }
 0x35e   : > { %v1008_v40 = vadd.f32 1.4214138, %v1006_v38 }
 0x35f   : > { %v1011_v41 = vmul.f32 %v1009_v39, %v1001_v27 }
 0x360   : > { %v1010_v42 = vmul.f32 %v1008_v40, %v1000_v29 }
 0x361   : > { %v1013_v43 = vadd.f32 -0.28449672, %v1011_v41 }
 0x362   : > { %v1012_v44 = vadd.f32 -0.28449672, %v1010_v42 }
 0x363   : > { %v1015_v45 = vmul.f32 %v1013_v43, %v1001_v27 }
 0x364   : > { %v1014_v46 = vmul.f32 %v1012_v44, %v1000_v29 }
 0x365   : > { %v1017_v47 = vadd.f32 0.2548296, %v1015_v45 }
 0x366   : > { %v1016_v48 = vadd.f32 0.2548296, %v1014_v46 }
 0x367   : > { %v1019_v49 = vmul.f32 %v1017_v47, %v1001_v27 }
 0x368   : > { %v1018_v51 = vmul.f32 %v1016_v48, %v1000_v29 }
 0x369   : > { %v1029_v53 = vmul.f32 %v3258_v50, %v1019_v49 }
 0x36a   : > { %v1028_v54 = vmul.f32 %v3260_v52, %v1018_v51 }
 0x36b   : > { %v1031_v55 = vsub.f32 1.0, %v1029_v53 }
 0x36c   : > { %v1030_v58 = vsub.f32 1.0, %v1028_v54 }
 0x36d   : > { %v1033_v59 = vmul.f32 %v1031_v55, %v987_v57 }
 0x36e   : > { %v1032_v61 = vmul.f32 %v1030_v58, %v986_v60 }
 0x36f   : > { %v1035_v63 = vadd.f32 1.0, %v1033_v59 }
 0x370   : > { %v1034_v1 = vadd.f32 1.0, %v1032_v61 }
 0x371   : > { %v1037_v2 = vmul.f32 %v1035_v63, %v981_v62 }
 0x372   : > { %v1036_v3 = vmul.f32 %v1034_v1, %v980_v0 }
 0x373   : > { %v1039_v4 = vpack.c.bf16 %v1037_v2, %v1037_v2 }
 0x374   : > { %v1038_v5 = vpack.c.bf16 %v1036_v3, %v1036_v3 }
 0x375   : > { %1207 = vmatprep.mubr.bf16.mxu1 %v1039_v4 }
 0x376   : > { %1208 = vmatmul.mubr.bf16.vlgmr.msra.gmra.mrb[0].mxu1 %v1038_v5 }
 0x449   : > { %v2874_v6 = vpop.f32.mrb[0].mxu1 }
 0x44a   : > { %v2875_v8 = vpop.f32.mrb[1].mxu1 }
 0x44b   : > { %v2876_v11 = vadd.f32 %v2875_v8, %v2874_v6  ;;  %v2877_v12 = vpop.f32.mrb[2].mxu1 }
 0x44c   : > { %v2878_v13 = vpop.f32.mrb[3].mxu1 }
 0x44d   : > { %v1210_v14 = vadd.f32 %v2876_v11, %v2781_v7 }
 0x44f   : > { %1217 = vadd.xlane.f32.xlu1 %v1210_v14  ;;  %v1221_v9 = vmul.f32 %v1210_v14, %v1210_v14 }
 0x453   : > { %1222 = vadd.xlane.f32.xlu1 %v1221_v9 }
 0x4dc   : > { %v1218_v10 = vpop.xlane.xlu1 %1217 }
 0x4dd   : > { %v1220_v15 = vmul.f32 0.0078125, %v1218_v10 }
 0x4df   : > { %v1225_v17 = vmul.f32 %v1220_v15, %v1220_v15  ;;  %v1227_v21 = vsub.f32 %v1210_v14, %v1220_v15 }
 0x4e0   : > { %v1223_v16 = vpop.xlane.xlu1 %1222 }
 0x4e1   : > { %v1224_v18 = vmul.f32 0.0078125, %v1223_v16 }
 0x4e3   : > { %v1226_v19 = vsub.f32 %v1224_v18, %v1225_v17 }
 0x4e5   : > { %v1228_v20 = vadd.f32 1e-05, %v1226_v19 }
 0x4e7   : > { %3261 = vrsqrt.f32 %v1228_v20 }
 0x4f1   : > { %v3262_v22 = vpop.eup %3261 }
 0x4f2   : > { %v1230_v24 = vmul.f32 %v3262_v22, %v1227_v21 }
 0x4f4   : > { %v1237_v26 = vmul.f32 %v2798_v23, %v1230_v24 }
 0x4f6   : > { %v1244_v27 = vadd.f32 %v2799_v25, %v1237_v26 }
 0x4f8   : > { %v1246_v28 = vmul.f32 0.70710677, %v1244_v27  ;;  %v1245_v53 = vmul.f32 0.5, %v1244_v27 }
 0x4fa   : > { %v1249_v29 = vand.u32 2147483647, %v1246_v28  ;;  %vm1247_vm4 = vcmp.lt.f32.partialorder %v1246_v28, 0.0 }
 0x4fb   : > { %v1248_v51 = vsel %vm1247_vm4, -1.0, %v3565_v56 }
 0x4fc   : > { %v1250_v30 = vmul.f32 0.3275911, %v1249_v29  ;;  %v1265_v34 = vsub.f32 0.0, %v1249_v29 }
 0x4fe   : > { %v1251_v31 = vadd.f32 1.0, %v1250_v30  ;;  %v1266_v37 = vmul.f32 %v1265_v34, %v1249_v29 }
 0x500   : > { %3263 = vrcp.f32 %v1251_v31  ;;  %v1267_v40 = vmul.f32 1.442695, %v1266_v37 }
 0x502   : > { %3265 = vpow2.f32 %v1267_v40 }
 0x50a   : > { %v3264_v32 = vpop.eup %3263 }
 0x50b   : > { %v1253_v33 = vmul.f32 %v3264_v32, %v1251_v31 }
 0x50c   : > { %v3266_v48 = vpop.eup %3265 }
 0x50d   : > { %v1254_v35 = vsub.f32 2.0, %v1253_v33 }
 0x50f   : > { %v1255_v36 = vmul.f32 %v3264_v32, %v1254_v35 }
 0x511   : > { %v1256_v38 = vmul.f32 1.0614054, %v1255_v36 }
 0x513   : > { %v1257_v39 = vadd.f32 -1.4531521, %v1256_v38 }
 0x515   : > { %v1258_v41 = vmul.f32 %v1257_v39, %v1255_v36 }
 0x517   : > { %v1259_v42 = vadd.f32 1.4214138, %v1258_v41 }
 0x519   : > { %v1260_v43 = vmul.f32 %v1259_v42, %v1255_v36 }
 0x51b   : > { %v1261_v44 = vadd.f32 -0.28449672, %v1260_v43 }
 0x51d   : > { %v1262_v45 = vmul.f32 %v1261_v44, %v1255_v36 }
 0x51f   : > { %v1263_v46 = vadd.f32 0.2548296, %v1262_v45 }
 0x521   : > { %v1264_v47 = vmul.f32 %v1263_v46, %v1255_v36 }
 0x523   : > { %v1269_v49 = vmul.f32 %v3266_v48, %v1264_v47 }
 0x525   : > { %v1270_v50 = vsub.f32 1.0, %v1269_v49 }
 0x527   : > { %v1271_v52 = vmul.f32 %v1270_v50, %v1248_v51 }
 0x529   : > { %v1272_v54 = vadd.f32 1.0, %v1271_v52 }
 0x52b   : > { %v1273_v55 = vmul.f32 %v1272_v54, %v1245_v53 }
 0x52d   : > { %1274 = vst [vmem:[#allocation3] sm:$0xff] %v1273_v55 }
 0x52e PF: > { %p2800_p0 = scmp.ne.s32.totalorder %s3705_s3, 2 }
 0x52f   : > { %vm1288_vm5 = vcmask (!%p2800_p0), 130048   ;;  %v3566_v58 = vmov (!%p2800_p0), 0.0   ;;  %vm3567_vm6 = vmmov (!%p2800_p0), 0   ;;  %s4329_s30 = sld [smem:[#allocation20_spill]] (!%p2800_p0)  ;;  %vm1343_vm7 = vcmask (!%p2800_p0), 64512   ;;  %s3568_s0 = smov (!%p2800_p0), 112  }
 0x530   : > { %1278 = sbr.rel (%p2800_p0) target bundleno = 3694 (0xe6e), region = 136  ;;  %2959 = vmatprep.subr.bf16.mxu0 (!%p2800_p0), %v3566_v58  ;;  %2961 = vmatprep.mubr.msk.bf16.mxu0 (!%p2800_p0), %vm3567_vm6, %v3566_v58  ;;  %s3569_s16 = smov (!%p2800_p0), 96   ;;  %vm1362_vm8 = vcmask (!%p2800_p0), 1043456   ;;  %vm2243_vm9 = vcmask (!%p2800_p0), 261120   ;;  %vm2245_vm10 = vcmask (!%p2800_p0), 392192   ;;  %vm2247_vm11 = vcmask (!%p2800_p0), 523264  }
 0x531   : > { %2983 = vmatprep.subr.bf16.mxu1 (!%p2800_p0), %v3566_v58  ;;  %2985 = vmatprep.mubr.msk.bf16.mxu1 (!%p2800_p0), %vm3567_vm6, %v3566_v58  ;;  %s3570_s17 = smov (!%p2800_p0), 80   ;;  %s3571_s29 = smov (!%p2800_p0), 64   ;;  %vm2249_vm12 = vcmask (!%p2800_p0), 654336   ;;  %vm2251_vm13 = vcmask (!%p2800_p0), 785408   ;;  %vm2253_vm14 = vcmask (!%p2800_p0), 916480  }
 0x532   : > { %s3572_s2 = smov (!%p2800_p0), 48   ;;  %s3573_s28 = smov (!%p2800_p0), 32  }
 0x533   : > { %s3574_s4 = smov (!%p2800_p0), 16   ;;  %s4330_s1 = sld [smem:[#allocation25_spill]] (!%p2800_p0) }
 0x534   : > { %v1281_v57 = vld [vmem:[#allocation2 + $0x8] sm:$0xff] (!%p2800_p0)  ;;  %v1279_v60 = vld [vmem:[#allocation2] sm:$0xff] (!%p2800_p0)  ;;  %v1283_v13 = vld [vmem:[#allocation2 + $0x10] sm:$0xff] (!%p2800_p0)  ;;  %s4331_s5 = sld [smem:[#allocation26_spill]] (!%p2800_p0)  ;;  %s4332_s20 = sld [smem:[#allocation27_spill]] (!%p2800_p0) }
 0x535   : > { %v1286_v59 = vpack.c.bf16 (!%p2800_p0), %v1281_v57, %v1281_v57  ;;  %v1285_v61 = vpack.c.bf16 (!%p2800_p0), %v1279_v60, %v1279_v60  ;;  %v4046_v63 = vld [vmem:[%s4329_s30] ss:$0 sm:$0xff] (!%p2800_p0)  ;;  %v4062_v14 = vpack.c.bf16 (!%p2800_p0), %v1283_v13, %v1283_v13  ;;  %s4335_s27 = sld [smem:[#allocation30_spill]] (!%p2800_p0) }
 0x537   : > { %v1293_v56 = vsel %vm1288_vm5, %v1286_v59, 0  ;;  %1410 = vrot.lane.b32.xlu1 %v1286_v59, %s3568_s0  ;;  %v1364_v9 = vsel %vm1362_vm8, %v4062_v14, 0 }
 0x538   : > { %2960 = vmatpush3.bf16.xpose.msra.mxu0 %v1293_v56 }
 0x539   : > { %2965 = vmatprep.subr.bf16.mxu0 %v3566_v58 }
 0x53b   : > { %1407 = vrot.lane.b32.xlu1 %v1285_v61, %s3568_s0 }
 0x53f   : > { %2962 = vmatmul.mubr.msk.bf16.vlgmr.msra.gmra.mrb[0].mxu0 %vm1288_vm5, %v1285_v61  ;;  %1524 = vrot.lane.b32.xlu1 %v1285_v61, %s3569_s16 }
 0x540   : > { %2967 = vmatprep.mubr.msk.bf16.mxu0 %vm3567_vm6, %v3566_v58  ;;  %2966 = vmatpush3.bf16.msra.mxu0 %v1364_v9 }
 0x541   : > { %2971 = vmatprep.subr.bf16.mxu0 %v3566_v58 }
 0x543   : > { %1641 = vrot.lane.b32.xlu1 %v1286_v59, %s3570_s17 }
 0x547   : > { %1639 = vrot.lane.b32.xlu1 %v1285_v61, %s3570_s17 }
 0x54b   : > { %1756 = vrot.lane.b32.xlu1 %v1286_v59, %s3571_s29 }
 0x54f   : > { %1754 = vrot.lane.b32.xlu1 %v1285_v61, %s3571_s29 }
 0x553   : > { %1871 = vrot.lane.b32.xlu1 %v1286_v59, %s3572_s2 }
 0x557   : > { %1986 = vrot.lane.b32.xlu1 %v1286_v59, %s3573_s28 }
 0x55b   : > { %2101 = vrot.lane.b32.xlu1 %v1286_v59, %s3574_s4 }
 0x5a9   : > { %v1411_v10 = vpop.permute.xlu1 %1410 }
 0x5aa   : > { %v1416_v32 = vsel %vm1288_vm5, %v1411_v10, 0 }
 0x5ad   : > { %v1408_v15 = vpop.permute.xlu1 %1407 }
 0x5b1   : > { %v1525_v16 = vpop.permute.xlu1 %1524 }
 0x5b5   : > { %v1642_v18 = vpop.permute.xlu1 %1641 }
 0x5b6   : > { %v1647_v23 = vsel %vm1288_vm5, %v1642_v18, 0 }
 0x5b9   : > { %v1640_v21 = vpop.permute.xlu1 %1639 }
 0x5bd   : > { %v1757_v25 = vpop.permute.xlu1 %1756 }
 0x5be   : > { %v1762_v30 = vsel %vm1288_vm5, %v1757_v25, 0 }
 0x5c1   : > { %v1755_v29 = vpop.permute.xlu1 %1754 }
 0x5c5   : > { %v1872_v33 = vpop.permute.xlu1 %1871 }
 0x5c6   : > { %v1877_v34 = vsel %vm1288_vm5, %v1872_v33, 0 }
 0x5c9   : > { %v1987_v35 = vpop.permute.xlu1 %1986 }
 0x5ca   : > { %v1992_v37 = vsel %vm1288_vm5, %v1987_v35, 0 }
 0x5cd   : > { %v2102_v38 = vpop.permute.xlu1 %2101 }
 0x5ce   : > { %v2107_v40 = vsel %vm1288_vm5, %v2102_v38, 0 }
 0x612   : > { %v1329_v62 = vpop.f32.mrb[0].mxu0 }
 0x613   : > { %v1335_v0 = vmul.f32 0.25, %v1329_v62  ;;  %v2963_v1 = vpop.f32.mrb[1].mxu0 }
 0x614   : > { %v1332_v2 = vpop.f32.mrb[2].mxu0 }
 0x615   : > { %v2964_v3 = vpop.f32.mrb[3].mxu0  ;;  %v1342_v4 = vadd.f32 %v4046_v63, %v1335_v0 }
 0x617   : > { %v1344_v5 = vsel %vm1343_vm7, %v1342_v4, -inf }
 0x618   : > { %1345 = vmax.xlane.f32.xlu0 %v1344_v5 }
 0x6a5   : > { %v1346_v6 = vpop.xlane.xlu0 %1345 }
 0x6a6   : > { %v1347_v7 = vsub.f32 %v1342_v4, %v1346_v6 }
 0x6a8   : > { %v1348_v8 = vmul.f32 1.442695, %v1347_v7 }
 0x6aa   : > { %3291 = vpow2.f32 %v1348_v8 }
 0x6b4   : > { %v3292_v11 = vpop.eup %3291 }
 0x6b5   : > { %v1350_v12 = vsel %vm1343_vm7, %v3292_v11, 0.0 }
 0x6b6   : > { %1351 = vadd.xlane.f32.xlu0 %v1350_v12 }
 0x6cc   : > { %1526 = vrot.lane.b32.xlu0 %v1286_v59, %s3569_s16 }
 0x6d0   : > { %1869 = vrot.lane.b32.xlu0 %v1285_v61, %s3572_s2 }
 0x6d4   : > { %1984 = vrot.lane.b32.xlu0 %v1285_v61, %s3573_s28 }
 0x6d8   : > { %2099 = vrot.lane.b32.xlu0 %v1285_v61, %s3574_s4 }
 0x743   : > { %v1352_v17 = vpop.xlane.xlu0 %1351 }
 0x744   : > { %3293 = vrcp.f32 %v1352_v17 }
 0x747   : > { %v1527_v19 = vpop.permute.xlu0 %1526 }
 0x748   : > { %v1532_v20 = vsel %vm1288_vm5, %v1527_v19, 0 }
 0x749   : > { %2984 = vmatpush3.bf16.xpose.msra.mxu1 %v1532_v20 }
 0x74a   : > { %2995 = vmatprep.subr.bf16.mxu1 %v3566_v58 }
 0x74b   : > { %v1870_v36 = vpop.permute.xlu0 %1869 }
 0x74e   : > { %v3294_v22 = vpop.eup %3293 }
 0x74f   : > { %v1354_v24 = vmul.f32 %v3294_v22, %v1352_v17  ;;  %v1985_v39 = vpop.permute.xlu0 %1984 }
 0x750   : > { %2986 = vmatmul.mubr.msk.bf16.vlgmr.msra.gmra.mrb[0].mxu1 %vm1288_vm5, %v1525_v16 }
 0x751   : > { %v1355_v26 = vsub.f32 2.0, %v1354_v24  ;;  %2996 = vmatpush3.bf16.xpose.msra.mxu1 %v1647_v23  ;;  %2997 = vmatprep.mubr.msk.bf16.mxu1 %vm3567_vm6, %v3566_v58 }
 0x752   : > { %3007 = vmatprep.subr.bf16.mxu1 %v3566_v58 }
 0x753   : > { %v1356_v27 = vmul.f32 %v3294_v22, %v1355_v26  ;;  %v2100_v41 = vpop.permute.xlu0 %2099 }
 0x755   : > { %v1357_v28 = vmul.f32 %v3292_v11, %v1356_v27 }
 0x757   : > { %v1358_v31 = vpack.c.bf16 %v1357_v28, %v1357_v28 }
 0x758   : > { %2998 = vmatmul.mubr.msk.bf16.vlgmr.msra.gmra.mrb[4].mxu1 %vm1288_vm5, %v1640_v21 }
 0x759   : > { %2968 = vmatmul.mubr.msk.bf16.vlgmr.msra.gmra.mrb[4].mxu0 %vm1343_vm7, %v1358_v31  ;;  %3008 = vmatpush3.bf16.xpose.msra.mxu1 %v1762_v30 }
 0x75a   : > { %2972 = vmatpush3.bf16.xpose.msra.mxu0 %v1416_v32  ;;  %3009 = vmatprep.mubr.msk.bf16.mxu1 %vm3567_vm6, %v3566_v58 }
 0x75b   : > { %2973 = vmatprep.mubr.msk.bf16.mxu0 %vm3567_vm6, %v3566_v58  ;;  %3019 = vmatprep.subr.bf16.mxu1 %v3566_v58 }
 0x75c   : > { %2977 = vmatprep.subr.bf16.mxu0 %v3566_v58 }
 0x760   : > { %3010 = vmatmul.mubr.msk.bf16.vlgmr.msra.gmra.mrb[8].mxu1 %vm1288_vm5, %v1755_v29 }
 0x761   : > { %2974 = vmatmul.mubr.msk.bf16.vlgmr.msra.gmra.mrb[8].mxu0 %vm1288_vm5, %v1408_v15  ;;  %3020 = vmatpush3.bf16.xpose.msra.mxu1 %v1877_v34 }
 0x762   : > { %3021 = vmatprep.mubr.msk.bf16.mxu1 %vm3567_vm6, %v3566_v58  ;;  %3031 = vmatprep.subr.bf16.mxu1 %v3566_v58 }
 0x763   : > { %2979 = vmatprep.mubr.msk.bf16.mxu0 %vm3567_vm6, %v3566_v58 }
 0x768   : > { %3022 = vmatmul.mubr.msk.bf16.vlgmr.msra.gmra.mrb[12].mxu1 %vm1288_vm5, %v1870_v36 }
 0x769   : > { %3032 = vmatpush3.bf16.xpose.msra.mxu1 %v1992_v37  ;;  %3033 = vmatprep.mubr.msk.bf16.mxu1 %vm3567_vm6, %v3566_v58 }
 0x76a   : > { %3043 = vmatprep.subr.bf16.mxu1 %v3566_v58 }
 0x770   : > { %3034 = vmatmul.mubr.msk.bf16.vlgmr.msra.gmra.mrb[16].mxu1 %vm1288_vm5, %v1985_v39 }
 0x771   : > { %3044 = vmatpush3.bf16.xpose.msra.mxu1 %v2107_v40  ;;  %3045 = vmatprep.mubr.msk.bf16.mxu1 %vm3567_vm6, %v3566_v58 }
 0x772   : > { %3055 = vmatprep.subr.bf16.mxu1 %v3566_v58 }
 0x778   : > { %3046 = vmatmul.mubr.msk.bf16.vlgmr.msra.gmra.mrb[20].mxu1 %vm1288_vm5, %v2100_v41 }
 0x779   : > { %3071 = vmatprep.mubr.msk.bf16.mxu1 %vm3567_vm6, %v3566_v58 }
 0x823   : > { %v1568_v42 = vpop.f32.mrb[0].mxu1 }
 0x824   : > { %v1574_v43 = vmul.f32 0.25, %v1568_v42  ;;  %v2987_v44 = vpop.f32.mrb[1].mxu1 }
 0x825   : > { %v1571_v45 = vpop.f32.mrb[2].mxu1 }
 0x826   : > { %v2988_v46 = vpop.f32.mrb[3].mxu1  ;;  %v1575_v47 = vadd.f32 %v4046_v63, %v1574_v43 }
 0x828   : > { %v1576_v48 = vsel %vm1343_vm7, %v1575_v47, -inf }
 0x829   : > { %1577 = vmax.xlane.f32.xlu0 %v1576_v48 }
 0x82b   : > { %v1683_v49 = vpop.f32.mrb[4].mxu1 }
 0x82c   : > { %v1689_v50 = vmul.f32 0.25, %v1683_v49  ;;  %v4110_v51 = vpop.f32.mrb[4].mxu0  ;;  %v2999_v52 = vpop.f32.mrb[5].mxu1 }
 0x82d   : > { %v2969_v53 = vpop.f32.mrb[5].mxu0  ;;  %v1686_v54 = vpop.f32.mrb[6].mxu1 }
 0x82e   : > { %v1403_v55 = vpop.f32.mrb[6].mxu0  ;;  %v3000_v57 = vpop.f32.mrb[7].mxu1  ;;  %v1690_v59 = vadd.f32 %v4046_v63, %v1689_v50 }
 0x82f   : > { %v2970_v56 = vpop.f32.mrb[7].mxu0 }
 0x830   : > { %v1691_v60 = vsel %vm1343_vm7, %v1690_v59, -inf }
 0x831   : > { %1692 = vmax.xlane.f32.xlu0 %v1691_v60 }
 0x833   : > { %v1798_v61 = vpop.f32.mrb[8].mxu1 }
 0x834   : > { %v1452_v62 = vpop.f32.mrb[8].mxu0  ;;  %v3011_v0 = vpop.f32.mrb[9].mxu1  ;;  %v1804_v1 = vmul.f32 0.25, %v1798_v61 }
 0x835   : > { %v1458_v2 = vmul.f32 0.25, %v1452_v62  ;;  %v2975_v3 = vpop.f32.mrb[9].mxu0  ;;  %v1801_v4 = vpop.f32.mrb[10].mxu1 }
 0x836   : > { %v1455_v5 = vpop.f32.mrb[10].mxu0  ;;  %v3012_v6 = vpop.f32.mrb[11].mxu1  ;;  %v1805_v12 = vadd.f32 %v4046_v63, %v1804_v1 }
 0x837   : > { %v2976_v7 = vpop.f32.mrb[11].mxu0  ;;  %v1459_v8 = vadd.f32 %v4046_v63, %v1458_v2 }
 0x838   : > { %v1806_v16 = vsel %vm1343_vm7, %v1805_v12, -inf }
 0x839   : > { %v1460_v11 = vsel %vm1343_vm7, %v1459_v8, -inf }
 0x83a   : > { %1461 = vmax.xlane.f32.xlu1 %v1460_v11 }
 0x83b   : > { %v1913_v13 = vpop.f32.mrb[12].mxu1 }
 0x83c   : > { %v1919_v9 = vmul.f32 0.25, %v1913_v13  ;;  %v3023_v10 = vpop.f32.mrb[13].mxu1 }
 0x83d   : > { %v1916_v15 = vpop.f32.mrb[14].mxu1 }
 0x83e   : > { %v3024_v17 = vpop.f32.mrb[15].mxu1  ;;  %1807 = vmax.xlane.f32.xlu1 %v1806_v16  ;;  %v1920_v18 = vadd.f32 %v4046_v63, %v1919_v9 }
 0x840   : > { %v1921_v19 = vsel %vm1343_vm7, %v1920_v18, -inf }
 0x841   : > { %1922 = vmax.xlane.f32.xlu0 %v1921_v19 }
 0x843   : > { %v2028_v20 = vpop.f32.mrb[16].mxu1 }
 0x844   : > { %v2034_v21 = vmul.f32 0.25, %v2028_v20  ;;  %v3035_v22 = vpop.f32.mrb[17].mxu1 }
 0x845   : > { %v2031_v23 = vpop.f32.mrb[18].mxu1 }
 0x846   : > { %v2035_v24 = vadd.f32 %v4046_v63, %v2034_v21  ;;  %v3036_v25 = vpop.f32.mrb[19].mxu1 }
 0x848   : > { %v2036_v26 = vsel %vm1343_vm7, %v2035_v24, -inf }
 0x849   : > { %2037 = vmax.xlane.f32.xlu1 %v2036_v26 }
 0x84b   : > { %v2143_v27 = vpop.f32.mrb[20].mxu1 }
 0x84c   : > { %v2149_v28 = vmul.f32 0.25, %v2143_v27  ;;  %v3047_v29 = vpop.f32.mrb[21].mxu1 }
 0x84d   : > { %v2146_v30 = vpop.f32.mrb[22].mxu1 }
 0x84e   : > { %v2150_v31 = vadd.f32 %v4046_v63, %v2149_v28  ;;  %v3048_v32 = vpop.f32.mrb[23].mxu1 }
 0x850   : > { %v2151_v33 = vsel %vm1343_vm7, %v2150_v31, -inf }
 0x851   : > { %2152 = vmax.xlane.f32.xlu0 %v2151_v33 }
 0x8b6   : > { %v1578_v34 = vpop.xlane.xlu0 %1577 }
 0x8b7   : > { %v1579_v35 = vsub.f32 %v1575_v47, %v1578_v34 }
 0x8b9   : > { %v1580_v36 = vmul.f32 1.442695, %v1579_v35 }
 0x8bb   : > { %3295 = vpow2.f32 %v1580_v36 }
 0x8be   : > { %v1693_v37 = vpop.xlane.xlu0 %1692 }
 0x8bf   : > { %v1694_v38 = vsub.f32 %v1690_v59, %v1693_v37 }
 0x8c1   : > { %v1695_v39 = vmul.f32 1.442695, %v1694_v38 }
 0x8c3   : > { %3297 = vpow2.f32 %v1695_v39 }
 0x8c5   : > { %v4124_v40 = vpop.eup %3295 }
 0x8c6   : > { %v1582_v41 = vsel %vm1343_vm7, %v4124_v40, 0.0 }
 0x8c7   : > { %1583 = vadd.xlane.f32.xlu0 %v1582_v41  ;;  %v1462_v42 = vpop.xlane.xlu1 %1461 }
 0x8c8   : > { %v1463_v63 = vsub.f32 %v1459_v8, %v1462_v42 }
 0x8ca   : > { %v1464_v43 = vmul.f32 1.442695, %v1463_v63 }
 0x8cb   : > { %v1808_v44 = vpop.xlane.xlu1 %1807 }
 0x8cc   : > { %3299 = vpow2.f32 %v1464_v43  ;;  %v1809_v45 = vsub.f32 %v1805_v12, %v1808_v44 }
 0x8cd   : > { %v4128_v46 = vpop.eup %3297 }
 0x8ce   : > { %v1810_v47 = vmul.f32 1.442695, %v1809_v45  ;;  %v1923_v48 = vpop.xlane.xlu0 %1922  ;;  %v1697_v49 = vsel %vm1343_vm7, %v4128_v46, 0.0 }
 0x8cf   : > { %v1924_v50 = vsub.f32 %v1920_v18, %v1923_v48  ;;  %1698 = vadd.xlane.f32.xlu1 %v1697_v49 }
 0x8d0   : > { %3301 = vpow2.f32 %v1810_v47 }
 0x8d1   : > { %v1925_v52 = vmul.f32 1.442695, %v1924_v50 }
 0x8d3   : > { %3303 = vpow2.f32 %v1925_v52 }
 0x8d6   : > { %v3300_v53 = vpop.eup %3299  ;;  %v2038_v60 = vpop.xlane.xlu1 %2037 }
 0x8d7   : > { %v1466_v54 = vsel %vm1343_vm7, %v3300_v53, 0.0  ;;  %v2039_v61 = vsub.f32 %v2035_v24, %v2038_v60 }
 0x8d8   : > { %1467 = vadd.xlane.f32.xlu1 %v1466_v54 }
 0x8d9   : > { %v2040_v62 = vmul.f32 1.442695, %v2039_v61 }
 0x8da   : > { %v4133_v55 = vpop.eup %3301 }
 0x8db   : > { %v1812_v57 = vsel %vm1343_vm7, %v4133_v55, 0.0  ;;  %3305 = vpow2.f32 %v2040_v62 }
 0x8dc   : > { %1813 = vadd.xlane.f32.xlu0 %v1812_v57 }
 0x8dd   : > { %v4137_v59 = vpop.eup %3303 }
 0x8de   : > { %v1927_v56 = vsel %vm1343_vm7, %v4137_v59, 0.0  ;;  %v2153_v0 = vpop.xlane.xlu0 %2152 }
 0x8df   : > { %v2154_v1 = vsub.f32 %v2150_v31, %v2153_v0 }
 0x8e0   : > { %1928 = vadd.xlane.f32.xlu0 %v1927_v56 }
 0x8e1   : > { %v2155_v2 = vmul.f32 1.442695, %v2154_v1 }
 0x8e3   : > { %3307 = vpow2.f32 %v2155_v2 }
 0x8e5   : > { %v4147_v3 = vpop.eup %3305 }
 0x8e6   : > { %v2042_v4 = vsel %vm1343_vm7, %v4147_v3, 0.0 }
 0x8e9   : > { %1476 = vrot.lane.b32.xlu1 %v4062_v14, %s3568_s0 }
 0x8ed   : > { %v4151_v5 = vpop.eup %3307 }
 0x8ee   : > { %v2157_v6 = vsel %vm1343_vm7, %v4151_v5, 0.0 }
 0x8f6   : > { %1591 = vrot.lane.b32.xlu0 %v4062_v14, %s3569_s16 }
 0x8fa   : > { %1706 = vrot.lane.b32.xlu0 %v4062_v14, %s3570_s17 }
 0x90d   : > { %2043 = vadd.xlane.f32.xlu1 %v2042_v4 }
 0x919   : > { %2158 = vadd.xlane.f32.xlu0 %v2157_v6 }
 0x91e   : > { %1821 = vrot.lane.b32.xlu1 %v4062_v14, %s3571_s29 }
 0x922   : > { %2051 = vrot.lane.b32.xlu1 %v4062_v14, %s3573_s28 }
 0x926   : > { %2166 = vrot.lane.b32.xlu1 %v4062_v14, %s3574_s4 }
 0x92f   : > { %1936 = vrot.lane.b32.xlu0 %v4062_v14, %s3572_s2 }
 0x954   : > { %v1584_v7 = vpop.xlane.xlu0 %1583 }
 0x955   : > { %3309 = vrcp.f32 %v1584_v7 }
 0x95c   : > { %v1699_v8 = vpop.xlane.xlu1 %1698 }
 0x95f   : > { %v3310_v10 = vpop.eup %3309 }
 0x960   : > { %v1586_v16 = vmul.f32 %v3310_v10, %v1584_v7 }
 0x962   : > { %v1587_v14 = vsub.f32 2.0, %v1586_v16 }
 0x964   : > { %v1588_v24 = vmul.f32 %v3310_v10, %v1587_v14 }
 0x965   : > { %v1468_v11 = vpop.xlane.xlu1 %1467 }
 0x966   : > { %3311 = vrcp.f32 %v1468_v11  ;;  %v1589_v28 = vmul.f32 %v4124_v40, %v1588_v24 }
 0x967   : > { %3313 = vrcp.f32 %v1699_v8 }
 0x968   : > { %v1590_v31 = vpack.c.bf16 %v1589_v28, %v1589_v28 }
 0x969   : > { %v1477_v12 = vpop.permute.xlu1 %1476  ;;  %v1814_v9 = vpop.xlane.xlu0 %1813 }
 0x96a   : > { %v1482_v13 = vsel %vm1362_vm8, %v1477_v12, 0  ;;  %3315 = vrcp.f32 %v1814_v9 }
 0x96b   : > { %2978 = vmatpush3.bf16.msra.mxu0 %v1482_v13 }
 0x96c   : > { %2989 = vmatprep.subr.bf16.mxu0 %v3566_v58 }
 0x96d   : > { %v1929_v18 = vpop.xlane.xlu0 %1928 }
 0x96e   : > { %3317 = vrcp.f32 %v1929_v18 }
 0x970   : > { %v3312_v15 = vpop.eup %3311 }
 0x971   : > { %v1470_v17 = vmul.f32 %v3312_v15, %v1468_v11  ;;  %v3314_v21 = vpop.eup %3313  ;;  %v1592_v23 = vpop.permute.xlu0 %1591 }
 0x972   : > { %v1701_v25 = vmul.f32 %v3314_v21, %v1699_v8  ;;  %v1597_v27 = vsel %vm1362_vm8, %v1592_v23, 0  ;;  %v3270_v23 = vld [vmem:[#allocation9 + $0x18] sm:$0xff]  }
 0x973   : > { %v1471_v19 = vsub.f32 2.0, %v1470_v17 }
 0x974   : > { %v1702_v29 = vsub.f32 2.0, %v1701_v25  ;;  %v3316_v36 = vpop.eup %3315 }
 0x975   : > { %v1472_v20 = vmul.f32 %v3312_v15, %v1471_v19  ;;  %v1707_v30 = vpop.permute.xlu0 %1706  ;;  %v1816_v37 = vmul.f32 %v3316_v36, %v1814_v9 }
 0x976   : > { %v1703_v32 = vmul.f32 %v3314_v21, %v1702_v29  ;;  %v1712_v33 = vsel %vm1362_vm8, %v1707_v30, 0  ;;  %v3268_v21 = vld [vmem:[#allocation9 + $0x8] sm:$0xff]   ;;  %v3273_v30 = vld [vmem:[#allocation9 + $0x30] sm:$0xff]  }
 0x977   : > { %v1473_v22 = vmul.f32 %v3300_v53, %v1472_v20  ;;  %v1817_v38 = vsub.f32 2.0, %v1816_v37  ;;  %v3267_v20 = vld [vmem:[#allocation9] sm:$0xff]   ;;  %v3272_v29 = vld [vmem:[#allocation9 + $0x28] sm:$0xff]  }
 0x978   : > { %v1704_v34 = vmul.f32 %v4128_v46, %v1703_v32  ;;  %v3318_v40 = vpop.eup %3317  ;;  %3056 = vmatpush3.bf16.msra.mxu1 %v3267_v20  ;;  %v3283_v20 = vld [vmem:[#allocation12] sm:$0xff]  }
 0x979   : > { %v1474_v26 = vpack.c.bf16 %v1473_v22, %v1473_v22  ;;  %v1818_v39 = vmul.f32 %v3316_v36, %v1817_v38  ;;  %v1931_v63 = vmul.f32 %v3318_v40, %v1929_v18  ;;  %3057 = vmatprep.subr.bf16.mxu1 %v3566_v58  ;;  %v3269_v22 = vld [vmem:[#allocation9 + $0x10] sm:$0xff]   ;;  %v3275_v36 = vld [vmem:[#allocation10] sm:$0xff]  }
 0x97a   : > { %v1705_v35 = vpack.c.bf16 %v1704_v34, %v1704_v34 }
 0x97b   : > { %2980 = vmatmul.mubr.msk.bf16.vlgmr.msra.gmra.mrb[12].mxu0 %vm1343_vm7, %v1474_v26  ;;  %v1819_v42 = vmul.f32 %v4133_v55, %v1818_v39  ;;  %v1932_v46 = vsub.f32 2.0, %v1931_v63  ;;  %v3271_v26 = vld [vmem:[#allocation9 + $0x20] sm:$0xff]   ;;  %v3276_v39 = vld [vmem:[#allocation10 + $0x8] sm:$0xff]  }
 0x97c   : > { %2990 = vmatpush3.bf16.msra.mxu0 %v1597_v27  ;;  %2991 = vmatprep.mubr.msk.bf16.mxu0 %vm3567_vm6, %v3566_v58 }
 0x97d   : > { %3001 = vmatprep.subr.bf16.mxu0 %v3566_v58  ;;  %v1820_v45 = vpack.c.bf16 %v1819_v42, %v1819_v42  ;;  %v1933_v48 = vmul.f32 %v3318_v40, %v1932_v46  ;;  %3058 = vmatpush3.bf16.msra.mxu1 %v3268_v21  ;;  %v3277_v42 = vld [vmem:[#allocation10 + $0x10] sm:$0xff]   ;;  %v3284_v21 = vld [vmem:[#allocation12 + $0x8] sm:$0xff]  }
 0x97e   : > { %3059 = vmatprep.subr.bf16.mxu1 %v3566_v58 }
 0x97f   : > { %v1934_v52 = vmul.f32 %v4137_v59, %v1933_v48  ;;  %v3280_v48 = vld [vmem:[#allocation10 + $0x28] sm:$0xff]  }
 0x981   : > { %v1935_v56 = vpack.c.bf16 %v1934_v52, %v1934_v52  ;;  %3060 = vmatpush3.bf16.msra.mxu1 %v3269_v22  ;;  %v3285_v22 = vld [vmem:[#allocation12 + $0x10] sm:$0xff]  }
 0x982   : > { %3061 = vmatprep.subr.bf16.mxu1 %v3566_v58 }
 0x983   : > { %2992 = vmatmul.mubr.msk.bf16.vlgmr.msra.gmra.mrb[16].mxu0 %vm1343_vm7, %v1590_v31 }
 0x984   : > { %3002 = vmatpush3.bf16.msra.mxu0 %v1712_v33  ;;  %3003 = vmatprep.mubr.msk.bf16.mxu0 %vm3567_vm6, %v3566_v58 }
 0x985   : > { %3013 = vmatprep.subr.bf16.mxu0 %v3566_v58  ;;  %3062 = vmatpush3.bf16.msra.mxu1 %v3270_v23  ;;  %v3286_v23 = vld [vmem:[#allocation12 + $0x18] sm:$0xff]  }
 0x986   : > { %3063 = vmatprep.subr.bf16.mxu1 %v3566_v58 }
 0x989   : > { %3064 = vmatpush3.bf16.msra.mxu1 %v3271_v26  ;;  %v3289_v26 = vld [vmem:[#allocation12 + $0x30] sm:$0xff]  }
 0x98a   : > { %3065 = vmatprep.subr.bf16.mxu1 %v3566_v58 }
 0x98b   : > { %3004 = vmatmul.mubr.msk.bf16.vlgmr.msra.gmra.mrb[20].mxu0 %vm1343_vm7, %v1705_v35  ;;  %v3274_v35 = vld [vmem:[#allocation9 + $0x38] sm:$0xff]  }
 0x98c   : > { %3015 = vmatprep.mubr.msk.bf16.mxu0 %vm3567_vm6, %v3566_v58 }
 0x98d   : > { %3066 = vmatpush3.bf16.msra.mxu1 %v3272_v29 }
 0x98e   : > { %3067 = vmatprep.subr.bf16.mxu1 %v3566_v58 }
 0x991   : > { %3068 = vmatpush3.bf16.msra.mxu1 %v3273_v30 }
 0x992   : > { %3069 = vmatprep.subr.bf16.mxu1 %v3566_v58 }
 0x995   : > { %3070 = vmatpush3.bf16.msra.mxu1 %v3274_v35 }
 0x996   : > { %3095 = vmatprep.subr.bf16.mxu1 %v3566_v58 }
 0x99a   : > { %v2044_v41 = vpop.xlane.xlu1 %2043 }
 0x99b   : > { %3319 = vrcp.f32 %v2044_v41 }
 0x99e   : > { %v1822_v43 = vpop.permute.xlu1 %1821 }
 0x99f   : > { %v1827_v44 = vsel %vm1362_vm8, %v1822_v43, 0 }
 0x9a0   : > { %3014 = vmatpush3.bf16.msra.mxu0 %v1827_v44  ;;  %v3278_v44 = vld [vmem:[#allocation10 + $0x18] sm:$0xff]  }
 0x9a1   : > { %3025 = vmatprep.subr.bf16.mxu0 %v3566_v58 }
 0x9a2   : > { %v2052_v55 = vpop.permute.xlu1 %2051 }
 0x9a3   : > { %3016 = vmatmul.mubr.msk.bf16.vlgmr.msra.gmra.mrb[24].mxu0 %vm1343_vm7, %v1820_v45  ;;  %v2057_v61 = vsel %vm1362_vm8, %v2052_v55, 0 }
 0x9a4   : > { %3027 = vmatprep.mubr.msk.bf16.mxu0 %vm3567_vm6, %v3566_v58 }
 0x9a5   : > { %v3320_v47 = vpop.eup %3319 }
 0x9a6   : > { %v2046_v49 = vmul.f32 %v3320_v47, %v2044_v41  ;;  %v2159_v50 = vpop.xlane.xlu0 %2158  ;;  %v2167_v1 = vpop.permute.xlu1 %2166 }
 0x9a7   : > { %3321 = vrcp.f32 %v2159_v50  ;;  %v2172_v6 = vsel %vm1362_vm8, %v2167_v1, 0 }
 0x9a8   : > { %v2047_v53 = vsub.f32 2.0, %v2046_v49 }
 0x9aa   : > { %v1937_v54 = vpop.permute.xlu0 %1936  ;;  %v2048_v60 = vmul.f32 %v3320_v47, %v2047_v53  ;;  %v3279_v47 = vld [vmem:[#allocation10 + $0x20] sm:$0xff]  }
 0x9ab   : > { %v1942_v57 = vsel %vm1362_vm8, %v1937_v54, 0 }
 0x9ac   : > { %3026 = vmatpush3.bf16.msra.mxu0 %v1942_v57  ;;  %v2049_v59 = vmul.f32 %v4147_v3, %v2048_v60 }
 0x9ad   : > { %3037 = vmatprep.subr.bf16.mxu0 %v3566_v58 }
 0x9ae   : > { %v2050_v4 = vpack.c.bf16 %v2049_v59, %v2049_v59 }
 0x9af   : > { %3028 = vmatmul.mubr.msk.bf16.vlgmr.msra.gmra.mrb[28].mxu0 %vm1343_vm7, %v1935_v56 }
 0x9b0   : > { %3038 = vmatpush3.bf16.msra.mxu0 %v2057_v61  ;;  %3039 = vmatprep.mubr.msk.bf16.mxu0 %vm3567_vm6, %v3566_v58 }
 0x9b1   : > { %v3322_v62 = vpop.eup %3321  ;;  %3049 = vmatprep.subr.bf16.mxu0 %v3566_v58 }
 0x9b2   : > { %v2161_v0 = vmul.f32 %v3322_v62, %v2159_v50 }
 0x9b4   : > { %v2162_v2 = vsub.f32 2.0, %v2161_v0 }
 0x9b6   : > { %v2163_v7 = vmul.f32 %v3322_v62, %v2162_v2 }
 0x9b7   : > { %3040 = vmatmul.mubr.msk.bf16.vlgmr.msra.gmra.mrb[32].mxu0 %vm1343_vm7, %v2050_v4  ;;  %v3281_v4 = vld [vmem:[#allocation10 + $0x30] sm:$0xff]  }
 0x9b8   : > { %3050 = vmatpush3.bf16.msra.mxu0 %v2172_v6  ;;  %3051 = vmatprep.mubr.msk.bf16.mxu0 %vm3567_vm6, %v3566_v58  ;;  %v2164_v8 = vmul.f32 %v4151_v5, %v2163_v7  ;;  %v2818_v6 = vld [vmem:[%s4330_s1] ss:$0 sm:$0xff] }
 0x9b9   : > { %3075 = vmatprep.subr.bf16.mxu0 %v3566_v58 }
 0x9ba   : > { %v2165_v3 = vpack.c.bf16 %v2164_v8, %v2164_v8  ;;  %v2367_v8 = vld [vmem:[#allocation3] sm:$0xff] }
 0x9bf   : > { %3052 = vmatmul.mubr.msk.bf16.vlgmr.msra.gmra.mrb[36].mxu0 %vm1343_vm7, %v2165_v3 }
 0x9c0   : > { %3091 = vmatprep.mubr.msk.bf16.mxu0 %vm3567_vm6, %v3566_v58  ;;  %3076 = vmatpush3.bf16.msra.mxu0 %v3275_v36 }
 0x9c1   : > { %3077 = vmatprep.subr.bf16.mxu0 %v3566_v58 }
 0x9c4   : > { %3078 = vmatpush3.bf16.msra.mxu0 %v3276_v39 }
 0x9c5   : > { %3079 = vmatprep.subr.bf16.mxu0 %v3566_v58 }
 0x9c8   : > { %3080 = vmatpush3.bf16.msra.mxu0 %v3277_v42 }
 0x9c9   : > { %3081 = vmatprep.subr.bf16.mxu0 %v3566_v58 }
 0x9cc   : > { %3082 = vmatpush3.bf16.msra.mxu0 %v3278_v44 }
 0x9cd   : > { %3083 = vmatprep.subr.bf16.mxu0 %v3566_v58 }
 0x9d0   : > { %3084 = vmatpush3.bf16.msra.mxu0 %v3279_v47 }
 0x9d1   : > { %3085 = vmatprep.subr.bf16.mxu0 %v3566_v58 }
 0x9d4   : > { %3086 = vmatpush3.bf16.msra.mxu0 %v3280_v48 }
 0x9d5   : > { %3087 = vmatprep.subr.bf16.mxu0 %v3566_v58 }
 0x9d8   : > { %3088 = vmatpush3.bf16.msra.mxu0 %v3281_v4 }
 0x9d9   : > { %3089 = vmatprep.subr.bf16.mxu0 %v3566_v58 }
 0xa4e   : > { %v1518_v11 = vpop.f32.mrb[12].mxu0 }
 0xa4f   : > { %2215 = vrot.lane.b32.xlu1 %v1518_v11, %s3574_s4  ;;  %v2981_v12 = vpop.f32.mrb[13].mxu0 }
 0xa50   : > { %v1521_v13 = vpop.f32.mrb[14].mxu0 }
 0xa51   : > { %v2982_v9 = vpop.f32.mrb[15].mxu0 }
 0xa56   : > { %v1633_v10 = vpop.f32.mrb[16].mxu0 }
 0xa57   : > { %2219 = vrot.lane.b32.xlu1 %v1633_v10, %s3573_s28  ;;  %v2993_v15 = vpop.f32.mrb[17].mxu0 }
 0xa58   : > { %v1636_v16 = vpop.f32.mrb[18].mxu0  ;;  %v2827_v15 = vld [vmem:[%s4331_s5] ss:$0 sm:$0xff] }
 0xa59   : > { %v2994_v5 = vpop.f32.mrb[19].mxu0 }
 0xa5e   : > { %v1748_v17 = vpop.f32.mrb[20].mxu0 }
 0xa5f   : > { %2223 = vrot.lane.b32.xlu0 %v1748_v17, %s3572_s2  ;;  %v3005_v18 = vpop.f32.mrb[21].mxu0  ;;  %s4334_s2 = sld [smem:[#allocation29_spill]] }
 0xa60   : > { %v1751_v19 = vpop.f32.mrb[22].mxu0 }
 0xa61   : > { %v3006_v14 = vpop.f32.mrb[23].mxu0 }
 0xa76   : > { %v1863_v24 = vpop.f32.mrb[24].mxu0 }
 0xa77   : > { %2227 = vrot.lane.b32.xlu1 %v1863_v24, %s3571_s29  ;;  %v3017_v25 = vpop.f32.mrb[25].mxu0  ;;  %v3287_v24 = vld [vmem:[#allocation12 + $0x20] sm:$0xff]  }
 0xa78   : > { %v1866_v27 = vpop.f32.mrb[26].mxu0  ;;  %v3288_v25 = vld [vmem:[#allocation12 + $0x28] sm:$0xff]  }
 0xa79   : > { %v3018_v28 = vpop.f32.mrb[27].mxu0  ;;  %v3290_v27 = vld [vmem:[#allocation12 + $0x38] sm:$0xff]  }
 0xa82   : > { %v1978_v31 = vpop.f32.mrb[28].mxu0 }
 0xa83   : > { %2231 = vrot.lane.b32.xlu0 %v1978_v31, %s3570_s17  ;;  %v3029_v32 = vpop.f32.mrb[29].mxu0 }
 0xa84   : > { %v1981_v33 = vpop.f32.mrb[30].mxu0 }
 0xa85   : > { %v3030_v34 = vpop.f32.mrb[31].mxu0 }
 0xa8a   : > { %v2093_v37 = vpop.f32.mrb[32].mxu0 }
 0xa8b   : > { %2235 = vrot.lane.b32.xlu1 %v2093_v37, %s3569_s16  ;;  %v3041_v38 = vpop.f32.mrb[33].mxu0  ;;  %v2836_v37 = vld [vmem:[%s4332_s20] ss:$0 sm:$0xff]  ;;  %s4333_s16 = sld [smem:[#allocation28_spill]] }
 0xa8c   : > { %v2096_v40 = vpop.f32.mrb[34].mxu0 }
 0xa8d   : > { %v3042_v41 = vpop.f32.mrb[35].mxu0 }
 0xa92   : > { %v2208_v63 = vpop.f32.mrb[36].mxu0 }
 0xa93   : > { %2239 = vrot.lane.b32.xlu0 %v2208_v63, %s3568_s0  ;;  %v3053_v43 = vpop.f32.mrb[37].mxu0 }
 0xa94   : > { %v2211_v45 = vpop.f32.mrb[38].mxu0 }
 0xa95   : > { %v3054_v46 = vpop.f32.mrb[39].mxu0 }
 0xac1   : > { %v2216_v49 = vpop.permute.xlu1 %2215 }
 0xac2   : > { %v2242_v54 = vsel %vm1288_vm5, %v4110_v51, %v2216_v49  ;;  %v3282_v51 = vld [vmem:[#allocation10 + $0x38] sm:$0xff]  }
 0xac3   : > { %3090 = vmatpush3.bf16.msra.mxu0 %v3282_v51 }
 0xac9   : > { %v2220_v50 = vpop.permute.xlu1 %2219 }
 0xaca   : > { %v2244_v55 = vsel %vm2243_vm9, %v2242_v54, %v2220_v50 }
 0xad1   : > { %v2224_v52 = vpop.permute.xlu0 %2223 }
 0xad2   : > { %v2246_v56 = vsel %vm2245_vm10, %v2244_v55, %v2224_v52 }
 0xae9   : > { %v2228_v53 = vpop.permute.xlu1 %2227 }
 0xaea   : > { %v2248_v61 = vsel %vm2247_vm11, %v2246_v56, %v2228_v53 }
 0xaf5   : > { %v2232_v57 = vpop.permute.xlu0 %2231 }
 0xaf6   : > { %v2250_v62 = vsel %vm2249_vm12, %v2248_v61, %v2232_v57 }
 0xafd   : > { %v2236_v60 = vpop.permute.xlu1 %2235 }
 0xafe   : > { %v2252_v59 = vsel %vm2251_vm13, %v2250_v62, %v2236_v60 }
 0xb05   : > { %v2240_v0 = vpop.permute.xlu0 %2239 }
 0xb06   : > { %v2254_v1 = vsel %vm2253_vm14, %v2252_v59, %v2240_v0 }
 0xb07   : > { %v2255_v2 = vpack.c.bf16 %v2254_v1, %v2254_v1 }
 0xb09   : > { %3072 = vmatmul.mubr.bf16.vlgmr.msra.gmra.mrb[24].mxu1 %v2255_v2  ;;  %v3575_v2 = vmov 1.0  }
 0xb0a   : > { %3111 = vmatprep.mubr.msk.bf16.mxu1 %vm3567_vm6, %v3566_v58  ;;  %3096 = vmatpush3.bf16.msra.mxu1 %v3283_v20 }
 0xb0b   : > { %3097 = vmatprep.subr.bf16.mxu1 %v3566_v58 }
 0xb0e   : > { %3098 = vmatpush3.bf16.msra.mxu1 %v3284_v21 }
 0xb0f   : > { %3099 = vmatprep.subr.bf16.mxu1 %v3566_v58 }
 0xb12   : > { %3100 = vmatpush3.bf16.msra.mxu1 %v3285_v22 }
 0xb13   : > { %3101 = vmatprep.subr.bf16.mxu1 %v3566_v58 }
 0xb16   : > { %3102 = vmatpush3.bf16.msra.mxu1 %v3286_v23 }
 0xb17   : > { %3103 = vmatprep.subr.bf16.mxu1 %v3566_v58 }
 0xb1a   : > { %3104 = vmatpush3.bf16.msra.mxu1 %v3287_v24 }
 0xb1b   : > { %3105 = vmatprep.subr.bf16.mxu1 %v3566_v58 }
 0xb1e   : > { %3106 = vmatpush3.bf16.msra.mxu1 %v3288_v25 }
 0xb1f   : > { %3107 = vmatprep.subr.bf16.mxu1 %v3566_v58 }
 0xb22   : > { %3108 = vmatpush3.bf16.msra.mxu1 %v3289_v26 }
 0xb23   : > { %3109 = vmatprep.subr.bf16.mxu1 %v3566_v58  ;;  %v2837_v58 = vld [vmem:[%s4333_s16] ss:$0 sm:$0xff] }
 0xb26   : > { %3110 = vmatpush3.bf16.msra.mxu1 %v3290_v27 }
 0xbdc   : > { %v2361_v7 = vpop.f32.mrb[24].mxu1 }
 0xbdd   : > { %v2362_v3 = vadd.f32 %v2818_v6, %v2361_v7  ;;  %v3073_v11 = vpop.f32.mrb[25].mxu1 }
 0xbde   : > { %v2364_v12 = vpop.f32.mrb[26].mxu1  ;;  %v2838_v11 = vld [vmem:[%s4334_s2] ss:$0 sm:$0xff] }
 0xbdf   : > { %v2368_v13 = vadd.f32 %v2367_v8, %v2362_v3  ;;  %v3074_v9 = vpop.f32.mrb[27].mxu1 }
 0xbe1   : > { %v2369_v10 = vpack.c.bf16 %v2368_v13, %v2368_v13 }
 0xbe3   : > { %3092 = vmatmul.mubr.bf16.vlgmr.msra.gmra.mrb[40].mxu0 %v2369_v10 }
 0xcb6   : > { %v2475_v16 = vpop.f32.mrb[40].mxu0 }
 0xcb7   : > { %v2476_v5 = vadd.f32 %v2827_v15, %v2475_v16  ;;  %v3093_v17 = vpop.f32.mrb[41].mxu0 }
 0xcb8   : > { %v2478_v18 = vpop.f32.mrb[42].mxu0 }
 0xcb9   : > { %2483 = vadd.xlane.f32.xlu1 %v2476_v5  ;;  %v3094_v19 = vpop.f32.mrb[43].mxu0  ;;  %v2487_v14 = vmul.f32 %v2476_v5, %v2476_v5 }
 0xcbb   : > { %2488 = vadd.xlane.f32.xlu0 %v2487_v14 }
 0xd46   : > { %v2484_v28 = vpop.xlane.xlu1 %2483 }
 0xd47   : > { %v2486_v29 = vmul.f32 0.0078125, %v2484_v28 }
 0xd48   : > { %v2489_v30 = vpop.xlane.xlu0 %2488 }
 0xd49   : > { %v2491_v31 = vmul.f32 %v2486_v29, %v2486_v29  ;;  %v2490_v32 = vmul.f32 0.0078125, %v2489_v30  ;;  %v2493_v35 = vsub.f32 %v2476_v5, %v2486_v29 }
 0xd4b   : > { %v2492_v33 = vsub.f32 %v2490_v32, %v2491_v31 }
 0xd4d   : > { %v2494_v34 = vadd.f32 1e-05, %v2492_v33 }
 0xd4f   : > { %3323 = vrsqrt.f32 %v2494_v34 }
 0xd59   : > { %v3324_v36 = vpop.eup %3323 }
 0xd5a   : > { %v2496_v38 = vmul.f32 %v3324_v36, %v2493_v35 }
 0xd5c   : > { %v2503_v39 = vmul.f32 %v2836_v37, %v2496_v38 }
 0xd5e   : > { %v2510_v40 = vadd.f32 %v2837_v58, %v2503_v39 }
 0xd60   : > { %v2512_v41 = vmul.f32 0.70710677, %v2510_v40  ;;  %v2511_v6 = vmul.f32 0.5, %v2510_v40 }
 0xd62   : > { %v2515_v42 = vand.u32 2147483647, %v2512_v41  ;;  %vm2513_vm15 = vcmp.lt.f32.partialorder %v2512_v41, 0.0 }
 0xd63   : > { %v2514_v4 = vsel %vm2513_vm15, -1.0, %v3575_v2 }
 0xd64   : > { %v2516_v63 = vmul.f32 0.3275911, %v2515_v42  ;;  %v2531_v46 = vsub.f32 0.0, %v2515_v42 }
 0xd66   : > { %v2517_v43 = vadd.f32 1.0, %v2516_v63  ;;  %v2532_v49 = vmul.f32 %v2531_v46, %v2515_v42 }
 0xd68   : > { %3325 = vrcp.f32 %v2517_v43  ;;  %v2533_v53 = vmul.f32 1.442695, %v2532_v49 }
 0xd6a   : > { %3327 = vpow2.f32 %v2533_v53 }
 0xd72   : > { %v3326_v44 = vpop.eup %3325 }
 0xd73   : > { %v2519_v45 = vmul.f32 %v3326_v44, %v2517_v43 }
 0xd74   : > { %v3328_v59 = vpop.eup %3327 }
 0xd75   : > { %v2520_v47 = vsub.f32 2.0, %v2519_v45 }
 0xd77   : > { %v2521_v48 = vmul.f32 %v3326_v44, %v2520_v47 }
 0xd79   : > { %v2522_v50 = vmul.f32 1.0614054, %v2521_v48 }
 0xd7b   : > { %v2523_v52 = vadd.f32 -1.4531521, %v2522_v50 }
 0xd7d   : > { %v2524_v54 = vmul.f32 %v2523_v52, %v2521_v48 }
 0xd7f   : > { %v2525_v55 = vadd.f32 1.4214138, %v2524_v54 }
 0xd81   : > { %v2526_v57 = vmul.f32 %v2525_v55, %v2521_v48 }
 0xd83   : > { %v2527_v56 = vadd.f32 -0.28449672, %v2526_v57 }
 0xd85   : > { %v2528_v60 = vmul.f32 %v2527_v56, %v2521_v48 }
 0xd87   : > { %v2529_v61 = vadd.f32 0.2548296, %v2528_v60 }
 0xd89   : > { %v2530_v62 = vmul.f32 %v2529_v61, %v2521_v48 }
 0xd8b   : > { %v2535_v0 = vmul.f32 %v3328_v59, %v2530_v62 }
 0xd8d   : > { %v2536_v1 = vsub.f32 1.0, %v2535_v0 }
 0xd8f   : > { %v2537_v51 = vmul.f32 %v2536_v1, %v2514_v4 }
 0xd91   : > { %v2538_v7 = vadd.f32 1.0, %v2537_v51 }
 0xd93   : > { %v2539_v8 = vmul.f32 %v2538_v7, %v2511_v6 }
 0xd95   : > { %v2540_v3 = vpack.c.bf16 %v2539_v8, %v2539_v8 }
 0xd97   : > { %3112 = vmatmul.mubr.bf16.vlgmr.msra.gmra.mrb[28].mxu1 %v2540_v3 }
 0xe6a   : > { %v2646_v12 = vpop.f32.mrb[28].mxu1 }
 0xe6b   : > { %v2647_v13 = vadd.f32 %v2838_v11, %v2646_v12  ;;  %v3113_v9 = vpop.f32.mrb[29].mxu1 }
 0xe6c   : > { %v2649_v10 = vpop.f32.mrb[30].mxu1 }
 0xe6d   : > { %2652 = vst [vmem:[%s4335_s27] sm:$0xff] %v2647_v13  ;;  %v3114_v15 = vpop.f32.mrb[31].mxu1 }
 0xe6e PF: > { %p31_p2 = scmp.ge.s32.totalorder %s3830_s23, 5   ;;  %s4336_s2 = smov %s3541_s25 }
 0xe6f   : > { %s4337_s25 = smov %s3545_s26  ;;  %s4338_s26 = smov %s3861_s14 }
 0xe70   : > { %s4339_s27 = smov %s3830_s23  ;;  %33 = sbr.rel (!%p31_p2) target bundleno = 18 (0x12), region = 173 }
 0xe77   :  { %2664 = vsyncpa [#allocation5], 1 }
 0xe78   :  { %2666 = vsyncpa [#allocation5 + $0x1], 1 }
 0xe79   :  { %2667 = vsyncpa [#allocation7], 1 }
 0xe7a   :  { %2668 = vsyncpa [#allocation11], 1 }

</bundles_post_ra>
